<compile_context>
chip_gen: v7x
topology: tpu7x:2x2x1
jax: 0.10.0
libtpu: 0.0.40
codegen_flags: <defaults>
</compile_context>

<pallas_src>
import jax
import jax.numpy as jnp
from jax.experimental import pallas as pl
from jax.experimental.pallas import tpu as pltpu


def _round_up(x, m):
    return (x + m - 1) // m * m


# ----------------------------- phase 1: linear --------------------------------
def _linear_kernel(x_ref, w_ref, b_ref, o_ref):
    o_ref[...] = (jnp.dot(x_ref[...], w_ref[...],
                          preferred_element_type=jnp.float32)
                  + b_ref[...]).astype(o_ref.dtype)


def _linear_pallas(x, w, b, *, row_block=256):
    """y = x @ w + b, tiled over rows (weight fully resident)."""
    M, K = x.shape
    N = w.shape[1]
    tm = min(row_block, _round_up(M, 8))
    Mp = _round_up(M, tm)
    if Mp != M:
        x = jnp.pad(x, ((0, Mp - M), (0, 0)))
    out = pl.pallas_call(
        _linear_kernel,
        out_shape=jax.ShapeDtypeStruct((Mp, N), jnp.float32),
        grid_spec=pltpu.PrefetchScalarGridSpec(
            num_scalar_prefetch=0,
            grid=(Mp // tm,),
            in_specs=[
                pl.BlockSpec((tm, K), lambda i: (i, 0)),
                pl.BlockSpec((K, N), lambda i: (0, 0)),
                pl.BlockSpec((1, N), lambda i: (0, 0)),
            ],
            out_specs=pl.BlockSpec((tm, N), lambda i: (i, 0)),
        ),
        compiler_params=pltpu.CompilerParams(
            dimension_semantics=("parallel",),
            vmem_limit_bytes=32 * 1024 * 1024,
        ),
    )(x, w, b)
    return out[:M]


# --------------------------- phase 3: classifier -------------------------------
def _classifier_kernel(h_ref, w1_ref, b1_ref, w2_ref, b2_ref, o_ref):
    z = jnp.dot(h_ref[...], w1_ref[...],
                preferred_element_type=jnp.float32) + b1_ref[...]
    # TODO(synk): Dropout(0.5) between the two Linears is treated as identity
    # (eval-mode semantics); training-mode RNG masking is not implemented.
    o_ref[...] = (jnp.dot(z, w2_ref[...], preferred_element_type=jnp.float32)
                  + b2_ref[...]).astype(o_ref.dtype)


def _classifier_pallas(h, w1, b1, w2, b2, *, row_block=256, col_block=512):
    """Fused Linear(H,4H) -> Linear(4H,dict) over all rows, tiled (rows, dict)."""
    M, H = h.shape
    H4 = w1.shape[1]
    N = w2.shape[1]
    tm = min(row_block, _round_up(M, 8))
    Mp = _round_up(M, tm)
    if Mp != M:
        h = jnp.pad(h, ((0, Mp - M), (0, 0)))
    if N <= col_block:
        tn, Np = N, N
        w2p, b2p = w2, b2
    else:
        tn = col_block
        Np = _round_up(N, tn)
        w2p = jnp.pad(w2, ((0, 0), (0, Np - N)))
        b2p = jnp.pad(b2, ((0, 0), (0, Np - N)))
    out = pl.pallas_call(
        _classifier_kernel,
        out_shape=jax.ShapeDtypeStruct((Mp, Np), jnp.float32),
        grid_spec=pltpu.PrefetchScalarGridSpec(
            num_scalar_prefetch=0,
            grid=(Mp // tm, Np // tn),
            in_specs=[
                pl.BlockSpec((tm, H), lambda i, j: (i, 0)),
                pl.BlockSpec((H, H4), lambda i, j: (0, 0)),
                pl.BlockSpec((1, H4), lambda i, j: (0, 0)),
                pl.BlockSpec((H4, tn), lambda i, j: (0, j)),
                pl.BlockSpec((1, tn), lambda i, j: (0, j)),
            ],
            out_specs=pl.BlockSpec((tm, tn), lambda i, j: (i, j)),
        ),
        compiler_params=pltpu.CompilerParams(
            dimension_semantics=("parallel", "parallel"),
            vmem_limit_bytes=32 * 1024 * 1024,
        ),
    )(h, w1, b1, w2p, b2p)
    return out[:M, :N]


# --------------------------- phase 2: recurrence -------------------------------
def _make_recurrent_kernel(n_layers, hidden_dim, time_block):
    H = hidden_dim
    L = n_layers
    Tt = time_block

    def kernel(*refs):
        idx = 0
        c0_ref = refs[idx]; idx += 1
        h0_ref = refs[idx]; idx += 1
        xg_ref = refs[idx]; idx += 1          # precomputed layer-0 gates (Tt, Bt, 4H)
        wh0_hbm = refs[idx]; idx += 1
        deep_hbm = []
        for _ in range(L - 1):
            deep_hbm.append((refs[idx], refs[idx + 1])); idx += 2
        htop_ref = refs[idx]; idx += 1
        cT_ref = refs[idx]; idx += 1
        hT_ref = refs[idx]; idx += 1
        c_sc = refs[idx]; idx += 1
        h_sc = refs[idx]; idx += 1
        wh0_vmem = refs[idx]; idx += 1
        deep_vmem = []
        for _ in range(L - 1):
            deep_vmem.append((refs[idx], refs[idx + 1])); idx += 2

        t = pl.program_id(1)                  # time-tile index (axis 0 is batch tiles)

        @pl.when(t == 0)
        def _init():
            # Stage constant weights once (per batch tile) into single-buffered VMEM
            # scratch — avoids the 2x double-buffering of blocked constant inputs.
            pltpu.sync_copy(wh0_hbm, wh0_vmem)
            for (w_h, b_h), (w_v, b_v) in zip(deep_hbm, deep_vmem):
                pltpu.sync_copy(w_h, w_v)
                pltpu.sync_copy(b_h, b_v)
            c_sc[...] = c0_ref[...].astype(jnp.float32)
            h_sc[...] = h0_ref[...].astype(jnp.float32)

        def lstm_step(gates, c_prev):
            # gate packing: [forget, input_sig, output, c_tilde]
            sig = jax.nn.sigmoid(gates[:, : 3 * H])     # one pass for the 3 sigmoid gates
            f_t = sig[:, 0 * H:1 * H]
            i_t = sig[:, 1 * H:2 * H]
            o_t = sig[:, 2 * H:3 * H]
            c_tld = jnp.tanh(gates[:, 3 * H:])
            c_new = c_prev * f_t + i_t * c_tld
            h_new = o_t * jnp.tanh(c_new)
            return c_new, h_new

        for tt in range(Tt):                            # Tt time steps per grid iteration
            # layer 0: input projection precomputed; only the recurrent matmul here.
            gates = xg_ref[tt] + jnp.dot(
                h_sc[0], wh0_vmem[...], preferred_element_type=jnp.float32)
            c_new, h_new = lstm_step(gates, c_sc[0])
            c_sc[0] = c_new
            h_sc[0] = h_new
            x = h_new
            for l in range(1, L):                       # deeper layers: fused [x,h] matmul
                w_v, b_v = deep_vmem[l - 1]
                xh = jnp.concatenate([x, h_sc[l]], axis=-1)          # (Bt, 2H)
                gates = jnp.dot(xh, w_v[...],
                                preferred_element_type=jnp.float32) + b_v[...]
                c_new, h_new = lstm_step(gates, c_sc[l])
                c_sc[l] = c_new
                h_sc[l] = h_new
                x = h_new
            htop_ref[tt] = x.astype(htop_ref.dtype)

        @pl.when(t == pl.num_programs(1) - 1)
        def _finalize():
            cT_ref[...] = c_sc[...].astype(cT_ref.dtype)
            hT_ref[...] = h_sc[...].astype(hT_ref.dtype)

    return kernel


# --------------------------------- wrapper ------------------------------------
def lstm_decoder_pallas(cell0, hidden0, sequence, params, *, time_block=4):
    """cell0/hidden0: [L, B, H]; sequence: [B, T, D] (PyTorch layout).

    Returns (outputs [B, T, dict_size], final_cell [L, B, H], final_hidden [L, B, H]).
    """
    L, B, H = cell0.shape
    _, T, D = sequence.shape
    layers = params["layers"]                    # list of (Wx, Wh, b)
    w1, b1, w2, b2 = params["classifier"]
    dict_size = w2.shape[-1]

    # phase 1: batched layer-0 input projection over the whole sequence
    seq_tm = jnp.transpose(sequence, (1, 0, 2))                     # [T, B, D]
    wx0, wh0, b0 = layers[0]
    xg = _linear_pallas(seq_tm.reshape(T * B, D), wx0, b0)
    xg = xg.reshape(T, B, 4 * H)                                    # precomputed gates

    # packed deep-layer weights: [x, h] @ [[Wx], [Wh]] = x@Wx + h@Wh (one MXU push)
    deep = [(jnp.concatenate([wx, wh], axis=0), bias) for (wx, wh, bias) in layers[1:]]

    # tile choices
    Tt = next(tb for tb in range(min(time_block, T), 0, -1) if T % tb == 0)
    Bt = 8 if (B > 8 and B % 8 == 0) else B      # batch tiles -> "parallel" grid axis

    inputs = [cell0, hidden0, xg, wh0]
    in_specs = [
        pl.BlockSpec((L, Bt, H), lambda bi, ti: (0, bi, 0)),
        pl.BlockSpec((L, Bt, H), lambda bi, ti: (0, bi, 0)),
        pl.BlockSpec((Tt, Bt, 4 * H), lambda bi, ti: (ti, bi, 0)),
        pl.BlockSpec(memory_space=pl.ANY),       # wh0: staged manually, single-buffered
    ]
    scratch = [
        pltpu.VMEM((L, Bt, H), jnp.float32),     # cell state carry
        pltpu.VMEM((L, Bt, H), jnp.float32),     # hidden state carry
        pltpu.VMEM((H, 4 * H), jnp.float32),     # wh0 staged in VMEM
    ]
    for (wxh, bias) in deep:
        inputs += [wxh, bias]
        in_specs += [pl.BlockSpec(memory_space=pl.ANY),
                     pl.BlockSpec(memory_space=pl.ANY)]
        scratch += [pltpu.VMEM((2 * H, 4 * H), jnp.float32),
                    pltpu.VMEM((1, 4 * H), jnp.float32)]

    out_specs = [
        pl.BlockSpec((Tt, Bt, H), lambda bi, ti: (ti, bi, 0)),   # top-layer hidden states
        pl.BlockSpec((L, Bt, H), lambda bi, ti: (0, bi, 0)),     # final cell
        pl.BlockSpec((L, Bt, H), lambda bi, ti: (0, bi, 0)),     # final hidden
    ]
    out_shape = [
        jax.ShapeDtypeStruct((T, B, H), jnp.float32),
        jax.ShapeDtypeStruct((L, B, H), cell0.dtype),
        jax.ShapeDtypeStruct((L, B, H), hidden0.dtype),
    ]

    htop, c_fin, h_fin = pl.pallas_call(
        _make_recurrent_kernel(L, H, Tt),
        out_shape=out_shape,
        grid_spec=pltpu.PrefetchScalarGridSpec(
            num_scalar_prefetch=0,
            grid=(B // Bt, T // Tt),
            in_specs=in_specs,
            out_specs=out_specs,
            scratch_shapes=scratch,
        ),
        compiler_params=pltpu.CompilerParams(
            dimension_semantics=("parallel", "arbitrary"),
            vmem_limit_bytes=32 * 1024 * 1024,
        ),
    )(*inputs)

    # phase 3: fused classifier over all (b, t) rows.  Transpose the small [T,B,H]
    # hidden buffer (not the large logits) so the classifier writes [B, T, dict] order.
    h_rows = jnp.transpose(htop, (1, 0, 2)).reshape(B * T, H)
    logits = _classifier_pallas(h_rows, w1, b1, w2, b2)
    outputs = logits.reshape(B, T, dict_size)
    return outputs, c_fin, h_fin


# ----------------------------- pure-JAX reference ------------------------------
def _ref_forward(cell0, hidden0, sequence, params):
    L, B, H = cell0.shape
    T = sequence.shape[1]
    layer_params = params["layers"]
    w1, b1, w2, b2 = params["classifier"]
    c = [cell0[l] for l in range(L)]
    h = [hidden0[l] for l in range(L)]
    outs = []
    for t in range(T):
        x = sequence[:, t]
        for l in range(L):
            wx, wh, b = layer_params[l]
            gates = x @ wx + h[l] @ wh + b
            # gate packing: [forget, input_sig, output, c_tilde]
            f_t = jax.nn.sigmoid(gates[:, 0 * H:1 * H])
            i_t = jax.nn.sigmoid(gates[:, 1 * H:2 * H])
            o_t = jax.nn.sigmoid(gates[:, 2 * H:3 * H])
            c_tld = jnp.tanh(gates[:, 3 * H:4 * H])
            c[l] = c[l] * f_t + i_t * c_tld
            h[l] = o_t * jnp.tanh(c[l])
            x = h[l]
        z = h[-1] @ w1 + b1
        outs.append(z @ w2 + b2)
    return jnp.stack(outs, axis=1), jnp.stack(c), jnp.stack(h)


# --------------------------------- parameters ----------------------------------
def _init_params(key, n_layers, input_dim, hidden_dim, dict_size):
    H = hidden_dim
    layers = []
    for l in range(n_layers):
        d_in = input_dim if l == 0 else H
        key, k1, k2, k3 = jax.random.split(key, 4)
        # gate packing order along last axis: [forget, input_sig, output, c_tilde]
        wx = jax.random.normal(k1, (d_in, 4 * H), jnp.float32) * 0.1
        wh = jax.random.normal(k2, (H, 4 * H), jnp.float32) * 0.1
        # combined bias = bias(x->h) + bias(h->h); they only ever appear summed
        b = jax.random.normal(k3, (1, 4 * H), jnp.float32) * 0.1
        layers.append((wx, wh, b))
    key, k1, k2, k3, k4 = jax.random.split(key, 5)
    w1 = jax.random.normal(k1, (H, 4 * H), jnp.float32) * 0.1
    b1 = jax.random.normal(k2, (1, 4 * H), jnp.float32) * 0.1
    w2 = jax.random.normal(k3, (4 * H, dict_size), jnp.float32) * 0.1
    b2 = jax.random.normal(k4, (1, dict_size), jnp.float32) * 0.1
    return {"layers": layers, "classifier": (w1, b1, w2, b2)}


if __name__ == "__main__":
    n_layers, input_dim, hidden_dim, dict_size = 2, 16, 32, 64
    B, T = 2, 8

    key = jax.random.PRNGKey(0)
    key, kc, kh, ks, kp = jax.random.split(key, 5)
    cell0 = jax.random.normal(kc, (n_layers, B, hidden_dim), jnp.float32)
    hidden0 = jax.random.normal(kh, (n_layers, B, hidden_dim), jnp.float32)
    sequence = jax.random.normal(ks, (B, T, input_dim), jnp.float32)
    params = _init_params(kp, n_layers, input_dim, hidden_dim, dict_size)

    outputs, c_fin, h_fin = jax.jit(lstm_decoder_pallas)(cell0, hidden0, sequence, params)
    jax.block_until_ready((outputs, c_fin, h_fin))

    ref_out, ref_c, ref_h = _ref_forward(cell0, hidden0, sequence, params)
    assert outputs.shape == (B, T, dict_size)
    assert jnp.allclose(outputs, ref_out, atol=2e-4, rtol=2e-4)
    assert jnp.allclose(c_fin, ref_c, atol=2e-4, rtol=2e-4)
    assert jnp.allclose(h_fin, ref_h, atol=2e-4, rtol=2e-4)

    print("KERNEL_OK")
</pallas_src>

<mosaic_0001>
module attributes {stable_mosaic.version = 11 : i64} {
  func.func @_linear_kernel(%arg0: i32, %arg1: memref<16x16xf32, #tpu.memory_space<vmem>>, %arg2: memref<16x128xf32, #tpu.memory_space<vmem>>, %arg3: memref<1x128xf32, #tpu.memory_space<vmem>>, %arg4: memref<16x128xf32, #tpu.memory_space<vmem>>) attributes {dimension_semantics = [#tpu.dimension_semantics<parallel>], iteration_bounds = array<i64: 1>, scalar_prefetch = 0 : i64, scratch_operands = 0 : i64, tpu.core_type = #tpu.core_type<tc>, window_params = [{transform_indices = @transform_0, window_bounds = array<i64: 16, 16>}, {pipeline_mode = #tpu.pipeline_mode<synchronous>, transform_indices = @transform_1, window_bounds = array<i64: 16, 128>}, {pipeline_mode = #tpu.pipeline_mode<synchronous>, transform_indices = @transform_2, window_bounds = array<i64: 1, 128>}, {transform_indices = @transform_3, window_bounds = array<i64: 16, 128>}]} {
    %c0 = arith.constant 0 : index
    %c0_0 = arith.constant 0 : index
    %0 = vector.load %arg1[%c0, %c0_0] : memref<16x16xf32, #tpu.memory_space<vmem>>, vector<16x16xf32>
    %c0_1 = arith.constant 0 : index
    %c0_2 = arith.constant 0 : index
    %1 = vector.load %arg2[%c0_1, %c0_2] : memref<16x128xf32, #tpu.memory_space<vmem>>, vector<16x128xf32>
    %cst = arith.constant dense<0.000000e+00> : vector<16x128xf32>
    %2 = tpu.matmul %0, %1, %cst {dimension_numbers = #tpu.dot_dimension_numbers<[1], [0], [0], [1], [0, 0, 1, 1], [], []>} : vector<16x16xf32>, vector<16x128xf32>, vector<16x128xf32> -> vector<16x128xf32>
    %c0_3 = arith.constant 0 : index
    %c0_4 = arith.constant 0 : index
    %3 = vector.load %arg3[%c0_3, %c0_4] : memref<1x128xf32, #tpu.memory_space<vmem>>, vector<1x128xf32>
    %4 = vector.broadcast %3 : vector<1x128xf32> to vector<16x128xf32>
    %5 = arith.addf %2, %4 : vector<16x128xf32>
    %c0_5 = arith.constant 0 : index
    %c0_6 = arith.constant 0 : index
    %6 = vector.load %arg4[%c0_5, %c0_6] : memref<16x128xf32, #tpu.memory_space<vmem>>, vector<16x128xf32>
    tpu.vector_store %arg4[%c0_5, %c0_6], %5 {strides = array<i32>} : memref<16x128xf32, #tpu.memory_space<vmem>>, vector<16x128xf32>,
    return
  }
  func.func @transform_0(%arg0: i32) -> (i32, i32) {
    %c0_i32 = arith.constant 0 : i32
    %c0_i32_0 = arith.constant 0 : i32
    return %arg0, %c0_i32 : i32, i32
  }
  func.func @transform_1(%arg0: i32) -> (i32, i32) {
    %c0_i32 = arith.constant 0 : i32
    %c0_i32_0 = arith.constant 0 : i32
    %c0_i32_1 = arith.constant 0 : i32
    return %c0_i32, %c0_i32_0 : i32, i32
  }
  func.func @transform_2(%arg0: i32) -> (i32, i32) {
    %c0_i32 = arith.constant 0 : i32
    %c0_i32_0 = arith.constant 0 : i32
    %c0_i32_1 = arith.constant 0 : i32
    return %c0_i32, %c0_i32_0 : i32, i32
  }
  func.func @transform_3(%arg0: i32) -> (i32, i32) {
    %c0_i32 = arith.constant 0 : i32
    %c0_i32_0 = arith.constant 0 : i32
    return %arg0, %c0_i32 : i32, i32
  }
}

module attributes {stable_mosaic.version = 11 : i64} {
  func.func @kernel(%arg0: i32, %arg1: i32, %arg2: memref<2x2x32xf32, #tpu.memory_space<vmem>>, %arg3: memref<2x2x32xf32, #tpu.memory_space<vmem>>, %arg4: memref<4x2x128xf32, #tpu.memory_space<vmem>>, %arg5: memref<32x128xf32, #tpu.memory_space<any>>, %arg6: memref<64x128xf32, #tpu.memory_space<any>>, %arg7: memref<1x128xf32, #tpu.memory_space<any>>, %arg8: memref<4x2x32xf32, #tpu.memory_space<vmem>>, %arg9: memref<2x2x32xf32, #tpu.memory_space<vmem>>, %arg10: memref<2x2x32xf32, #tpu.memory_space<vmem>>, %arg11: memref<2x2x32xf32, #tpu.memory_space<vmem>>, %arg12: memref<2x2x32xf32, #tpu.memory_space<vmem>>, %arg13: memref<32x128xf32, #tpu.memory_space<vmem>>, %arg14: memref<64x128xf32, #tpu.memory_space<vmem>>, %arg15: memref<1x128xf32, #tpu.memory_space<vmem>>) attributes {dimension_semantics = [#tpu.dimension_semantics<parallel>, #tpu.dimension_semantics<arbitrary>], iteration_bounds = array<i64: 1, 2>, scalar_prefetch = 0 : i64, scratch_operands = 5 : i64, tpu.core_type = #tpu.core_type<tc>, window_params = [{transform_indices = @transform_0, window_bounds = array<i64: 2, 2, 32>}, {transform_indices = @transform_1, window_bounds = array<i64: 2, 2, 32>}, {transform_indices = @transform_2, window_bounds = array<i64: 4, 2, 128>}, {}, {}, {}, {transform_indices = @transform_6, window_bounds = array<i64: 4, 2, 32>}, {transform_indices = @transform_7, window_bounds = array<i64: 2, 2, 32>}, {transform_indices = @transform_8, window_bounds = array<i64: 2, 2, 32>}]} {
    %c0_i32 = arith.constant 0 : i32
    %0 = arith.cmpi eq, %arg1, %c0_i32 : i32
    %1 = arith.extui %0 : i1 to i32
    %c0_i32_0 = arith.constant 0 : i32
    %2 = arith.cmpi ne, %1, %c0_i32_0 : i32
    scf.if %2 {
      "tpu.region"() ({
        %274 = tpu.sem_alloc : memref<!tpu.dma_semaphore, #tpu.memory_space<semaphore_mem>>
        tpu.enqueue_dma source(%arg5 : memref<32x128xf32, #tpu.memory_space<any>>) target(%arg13 : memref<32x128xf32, #tpu.memory_space<vmem>>) target_semaphore(%274 : memref<!tpu.dma_semaphore, #tpu.memory_space<semaphore_mem>>)
        tpu.wait_dma2 semaphore(%274 : memref<!tpu.dma_semaphore, #tpu.memory_space<semaphore_mem>>) src(%arg5 : memref<32x128xf32, #tpu.memory_space<any>>) dst(%arg13 : memref<32x128xf32, #tpu.memory_space<vmem>>)
        tpu.yield
      }) : () -> ()
      "tpu.region"() ({
        %274 = tpu.sem_alloc : memref<!tpu.dma_semaphore, #tpu.memory_space<semaphore_mem>>
        tpu.enqueue_dma source(%arg6 : memref<64x128xf32, #tpu.memory_space<any>>) target(%arg14 : memref<64x128xf32, #tpu.memory_space<vmem>>) target_semaphore(%274 : memref<!tpu.dma_semaphore, #tpu.memory_space<semaphore_mem>>)
        tpu.wait_dma2 semaphore(%274 : memref<!tpu.dma_semaphore, #tpu.memory_space<semaphore_mem>>) src(%arg6 : memref<64x128xf32, #tpu.memory_space<any>>) dst(%arg14 : memref<64x128xf32, #tpu.memory_space<vmem>>)
        tpu.yield
      }) : () -> ()
      "tpu.region"() ({
        %274 = tpu.sem_alloc : memref<!tpu.dma_semaphore, #tpu.memory_space<semaphore_mem>>
        tpu.enqueue_dma source(%arg7 : memref<1x128xf32, #tpu.memory_space<any>>) target(%arg15 : memref<1x128xf32, #tpu.memory_space<vmem>>) target_semaphore(%274 : memref<!tpu.dma_semaphore, #tpu.memory_space<semaphore_mem>>)
        tpu.wait_dma2 semaphore(%274 : memref<!tpu.dma_semaphore, #tpu.memory_space<semaphore_mem>>) src(%arg7 : memref<1x128xf32, #tpu.memory_space<any>>) dst(%arg15 : memref<1x128xf32, #tpu.memory_space<vmem>>)
        tpu.yield
      }) : () -> ()
      %c0_157 = arith.constant 0 : index
      %c0_158 = arith.constant 0 : index
      %c0_159 = arith.constant 0 : index
      %270 = vector.load %arg2[%c0_157, %c0_158, %c0_159] : memref<2x2x32xf32, #tpu.memory_space<vmem>>, vector<2x2x32xf32>
      %c0_160 = arith.constant 0 : index
      %c0_161 = arith.constant 0 : index
      %c0_162 = arith.constant 0 : index
      %271 = vector.load %arg11[%c0_160, %c0_161, %c0_162] : memref<2x2x32xf32, #tpu.memory_space<vmem>>, vector<2x2x32xf32>
      tpu.vector_store %arg11[%c0_160, %c0_161, %c0_162], %270 {strides = array<i32>} : memref<2x2x32xf32, #tpu.memory_space<vmem>>, vector<2x2x32xf32>,
      %c0_163 = arith.constant 0 : index
      %c0_164 = arith.constant 0 : index
      %c0_165 = arith.constant 0 : index
      %272 = vector.load %arg3[%c0_163, %c0_164, %c0_165] : memref<2x2x32xf32, #tpu.memory_space<vmem>>, vector<2x2x32xf32>
      %c0_166 = arith.constant 0 : index
      %c0_167 = arith.constant 0 : index
      %c0_168 = arith.constant 0 : index
      %273 = vector.load %arg12[%c0_166, %c0_167, %c0_168] : memref<2x2x32xf32, #tpu.memory_space<vmem>>, vector<2x2x32xf32>
      tpu.vector_store %arg12[%c0_166, %c0_167, %c0_168], %272 {strides = array<i32>} : memref<2x2x32xf32, #tpu.memory_space<vmem>>, vector<2x2x32xf32>,
    } else {
    }
    %c0 = arith.constant 0 : index
    %c0_1 = arith.constant 0 : index
    %c0_2 = arith.constant 0 : index
    %3 = vector.load %arg4[%c0, %c0_1, %c0_2] : memref<4x2x128xf32, #tpu.memory_space<vmem>>, vector<1x2x128xf32>
    %4 = vector.shape_cast %3 : vector<1x2x128xf32> to vector<2x128xf32>
    %c0_3 = arith.constant 0 : index
    %c0_4 = arith.constant 0 : index
    %c0_5 = arith.constant 0 : index
    %5 = vector.load %arg12[%c0_3, %c0_4, %c0_5] : memref<2x2x32xf32, #tpu.memory_space<vmem>>, vector<1x2x32xf32>
    %6 = vector.shape_cast %5 : vector<1x2x32xf32> to vector<2x32xf32>
    %c0_6 = arith.constant 0 : index
    %c0_7 = arith.constant 0 : index
    %7 = vector.load %arg13[%c0_6, %c0_7] : memref<32x128xf32, #tpu.memory_space<vmem>>, vector<32x128xf32>
    %cst = arith.constant dense<0.000000e+00> : vector<2x128xf32>
    %8 = tpu.matmul %6, %7, %cst {dimension_numbers = #tpu.dot_dimension_numbers<[1], [0], [0], [1], [0, 0, 1, 1], [], []>} : vector<2x32xf32>, vector<32x128xf32>, vector<2x128xf32> -> vector<2x128xf32>
    %9 = arith.addf %4, %8 : vector<2x128xf32>
    %c0_8 = arith.constant 0 : index
    %c0_9 = arith.constant 0 : index
    %c0_10 = arith.constant 0 : index
    %10 = vector.load %arg11[%c0_8, %c0_9, %c0_10] : memref<2x2x32xf32, #tpu.memory_space<vmem>>, vector<1x2x32xf32>
    %11 = vector.shape_cast %10 : vector<1x2x32xf32> to vector<2x32xf32>
    %12 = vector.extract_strided_slice %9 {offsets = [0, 0], sizes = [2, 96], strides = [1, 1]} : vector<2x128xf32> to vector<2x96xf32>
    %13 = arith.negf %12 : vector<2x96xf32>
    %14 = math.exp %13 : vector<2x96xf32>
    %cst_11 = arith.constant 1.000000e+00 : f32
    %15 = vector.broadcast %cst_11 : f32 to vector<2x96xf32>
    %16 = arith.addf %15, %14 : vector<2x96xf32>
    %17 = arith.divf %15, %16 : vector<2x96xf32>
    %18 = vector.extract_strided_slice %17 {offsets = [0, 0], sizes = [2, 32], strides = [1, 1]} : vector<2x96xf32> to vector<2x32xf32>
    %19 = vector.extract_strided_slice %17 {offsets = [0, 32], sizes = [2, 32], strides = [1, 1]} : vector<2x96xf32> to vector<2x32xf32>
    %20 = vector.extract_strided_slice %17 {offsets = [0, 64], sizes = [2, 32], strides = [1, 1]} : vector<2x96xf32> to vector<2x32xf32>
    %21 = vector.extract_strided_slice %9 {offsets = [0, 96], sizes = [2, 32], strides = [1, 1]} : vector<2x128xf32> to vector<2x32xf32>
    %22 = math.tanh %21 : vector<2x32xf32>
    %23 = arith.mulf %11, %18 : vector<2x32xf32>
    %24 = arith.mulf %19, %22 : vector<2x32xf32>
    %25 = arith.addf %23, %24 : vector<2x32xf32>
    %26 = math.tanh %25 : vector<2x32xf32>
    %27 = arith.mulf %20, %26 : vector<2x32xf32>
    %c0_12 = arith.constant 0 : index
    %c0_13 = arith.constant 0 : index
    %c0_14 = arith.constant 0 : index
    %28 = vector.load %arg11[%c0_12, %c0_13, %c0_14] : memref<2x2x32xf32, #tpu.memory_space<vmem>>, vector<1x2x32xf32>
    %29 = vector.shape_cast %28 : vector<1x2x32xf32> to vector<2x32xf32>
    %30 = vector.shape_cast %25 : vector<2x32xf32> to vector<1x2x32xf32>
    tpu.vector_store %arg11[%c0_12, %c0_13, %c0_14], %30 {strides = array<i32>} : memref<2x2x32xf32, #tpu.memory_space<vmem>>, vector<1x2x32xf32>,
    %c0_15 = arith.constant 0 : index
    %c0_16 = arith.constant 0 : index
    %c0_17 = arith.constant 0 : index
    %31 = vector.load %arg12[%c0_15, %c0_16, %c0_17] : memref<2x2x32xf32, #tpu.memory_space<vmem>>, vector<1x2x32xf32>
    %32 = vector.shape_cast %31 : vector<1x2x32xf32> to vector<2x32xf32>
    %33 = vector.shape_cast %27 : vector<2x32xf32> to vector<1x2x32xf32>
    tpu.vector_store %arg12[%c0_15, %c0_16, %c0_17], %33 {strides = array<i32>} : memref<2x2x32xf32, #tpu.memory_space<vmem>>, vector<1x2x32xf32>,
    %c1 = arith.constant 1 : index
    %c0_18 = arith.constant 0 : index
    %c0_19 = arith.constant 0 : index
    %34 = vector.load %arg12[%c1, %c0_18, %c0_19] : memref<2x2x32xf32, #tpu.memory_space<vmem>>, vector<1x2x32xf32>
    %35 = vector.shape_cast %34 : vector<1x2x32xf32> to vector<2x32xf32>
    %36 = tpu.concatenate %27, %35 in 1 : vector<2x32xf32>, vector<2x32xf32> -> vector<2x64xf32>
    %c0_20 = arith.constant 0 : index
    %c0_21 = arith.constant 0 : index
    %37 = vector.load %arg14[%c0_20, %c0_21] : memref<64x128xf32, #tpu.memory_space<vmem>>, vector<64x128xf32>
    %cst_22 = arith.constant dense<0.000000e+00> : vector<2x128xf32>
    %38 = tpu.matmul %36, %37, %cst_22 {dimension_numbers = #tpu.dot_dimension_numbers<[1], [0], [0], [1], [0, 0, 1, 1], [], []>} : vector<2x64xf32>, vector<64x128xf32>, vector<2x128xf32> -> vector<2x128xf32>
    %c0_23 = arith.constant 0 : index
    %c0_24 = arith.constant 0 : index
    %39 = vector.load %arg15[%c0_23, %c0_24] : memref<1x128xf32, #tpu.memory_space<vmem>>, vector<1x128xf32>
    %40 = vector.broadcast %39 : vector<1x128xf32> to vector<2x128xf32>
    %41 = arith.addf %38, %40 : vector<2x128xf32>
    %c1_25 = arith.constant 1 : index
    %c0_26 = arith.constant 0 : index
    %c0_27 = arith.constant 0 : index
    %42 = vector.load %arg11[%c1_25, %c0_26, %c0_27] : memref<2x2x32xf32, #tpu.memory_space<vmem>>, vector<1x2x32xf32>
    %43 = vector.shape_cast %42 : vector<1x2x32xf32> to vector<2x32xf32>
    %44 = vector.extract_strided_slice %41 {offsets = [0, 0], sizes = [2, 96], strides = [1, 1]} : vector<2x128xf32> to vector<2x96xf32>
    %45 = arith.negf %44 : vector<2x96xf32>
    %46 = math.exp %45 : vector<2x96xf32>
    %cst_28 = arith.constant 1.000000e+00 : f32
    %47 = vector.broadcast %cst_28 : f32 to vector<2x96xf32>
    %48 = arith.addf %47, %46 : vector<2x96xf32>
    %49 = arith.divf %47, %48 : vector<2x96xf32>
    %50 = vector.extract_strided_slice %49 {offsets = [0, 0], sizes = [2, 32], strides = [1, 1]} : vector<2x96xf32> to vector<2x32xf32>
    %51 = vector.extract_strided_slice %49 {offsets = [0, 32], sizes = [2, 32], strides = [1, 1]} : vector<2x96xf32> to vector<2x32xf32>
    %52 = vector.extract_strided_slice %49 {offsets = [0, 64], sizes = [2, 32], strides = [1, 1]} : vector<2x96xf32> to vector<2x32xf32>
    %53 = vector.extract_strided_slice %41 {offsets = [0, 96], sizes = [2, 32], strides = [1, 1]} : vector<2x128xf32> to vector<2x32xf32>
    %54 = math.tanh %53 : vector<2x32xf32>
    %55 = arith.mulf %43, %50 : vector<2x32xf32>
    %56 = arith.mulf %51, %54 : vector<2x32xf32>
    %57 = arith.addf %55, %56 : vector<2x32xf32>
    %58 = math.tanh %57 : vector<2x32xf32>
    %59 = arith.mulf %52, %58 : vector<2x32xf32>
    %c1_29 = arith.constant 1 : index
    %c0_30 = arith.constant 0 : index
    %c0_31 = arith.constant 0 : index
    %60 = vector.load %arg11[%c1_29, %c0_30, %c0_31] : memref<2x2x32xf32, #tpu.memory_space<vmem>>, vector<1x2x32xf32>
    %61 = vector.shape_cast %60 : vector<1x2x32xf32> to vector<2x32xf32>
    %62 = vector.shape_cast %57 : vector<2x32xf32> to vector<1x2x32xf32>
    tpu.vector_store %arg11[%c1_29, %c0_30, %c0_31], %62 {strides = array<i32>} : memref<2x2x32xf32, #tpu.memory_space<vmem>>, vector<1x2x32xf32>,
    %c1_32 = arith.constant 1 : index
    %c0_33 = arith.constant 0 : index
    %c0_34 = arith.constant 0 : index
    %63 = vector.load %arg12[%c1_32, %c0_33, %c0_34] : memref<2x2x32xf32, #tpu.memory_space<vmem>>, vector<1x2x32xf32>
    %64 = vector.shape_cast %63 : vector<1x2x32xf32> to vector<2x32xf32>
    %65 = vector.shape_cast %59 : vector<2x32xf32> to vector<1x2x32xf32>
    tpu.vector_store %arg12[%c1_32, %c0_33, %c0_34], %65 {strides = array<i32>} : memref<2x2x32xf32, #tpu.memory_space<vmem>>, vector<1x2x32xf32>,
    %c0_35 = arith.constant 0 : index
    %c0_36 = arith.constant 0 : index
    %c0_37 = arith.constant 0 : index
    %66 = vector.load %arg8[%c0_35, %c0_36, %c0_37] : memref<4x2x32xf32, #tpu.memory_space<vmem>>, vector<1x2x32xf32>
    %67 = vector.shape_cast %66 : vector<1x2x32xf32> to vector<2x32xf32>
    %68 = vector.shape_cast %59 : vector<2x32xf32> to vector<1x2x32xf32>
    tpu.vector_store %arg8[%c0_35, %c0_36, %c0_37], %68 {strides = array<i32>} : memref<4x2x32xf32, #tpu.memory_space<vmem>>, vector<1x2x32xf32>,
    %c1_38 = arith.constant 1 : index
    %c0_39 = arith.constant 0 : index
    %c0_40 = arith.constant 0 : index
    %69 = vector.load %arg4[%c1_38, %c0_39, %c0_40] : memref<4x2x128xf32, #tpu.memory_space<vmem>>, vector<1x2x128xf32>
    %70 = vector.shape_cast %69 : vector<1x2x128xf32> to vector<2x128xf32>
    %c0_41 = arith.constant 0 : index
    %c0_42 = arith.constant 0 : index
    %c0_43 = arith.constant 0 : index
    %71 = vector.load %arg12[%c0_41, %c0_42, %c0_43] : memref<2x2x32xf32, #tpu.memory_space<vmem>>, vector<1x2x32xf32>
    %72 = vector.shape_cast %71 : vector<1x2x32xf32> to vector<2x32xf32>
    %c0_44 = arith.constant 0 : index
    %c0_45 = arith.constant 0 : index
    %73 = vector.load %arg13[%c0_44, %c0_45] : memref<32x128xf32, #tpu.memory_space<vmem>>, vector<32x128xf32>
    %cst_46 = arith.constant dense<0.000000e+00> : vector<2x128xf32>
    %74 = tpu.matmul %72, %73, %cst_46 {dimension_numbers = #tpu.dot_dimension_numbers<[1], [0], [0], [1], [0, 0, 1, 1], [], []>} : vector<2x32xf32>, vector<32x128xf32>, vector<2x128xf32> -> vector<2x128xf32>
    %75 = arith.addf %70, %74 : vector<2x128xf32>
    %c0_47 = arith.constant 0 : index
    %c0_48 = arith.constant 0 : index
    %c0_49 = arith.constant 0 : index
    %76 = vector.load %arg11[%c0_47, %c0_48, %c0_49] : memref<2x2x32xf32, #tpu.memory_space<vmem>>, vector<1x2x32xf32>
    %77 = vector.shape_cast %76 : vector<1x2x32xf32> to vector<2x32xf32>
    %78 = vector.extract_strided_slice %75 {offsets = [0, 0], sizes = [2, 96], strides = [1, 1]} : vector<2x128xf32> to vector<2x96xf32>
    %79 = arith.negf %78 : vector<2x96xf32>
    %80 = math.exp %79 : vector<2x96xf32>
    %cst_50 = arith.constant 1.000000e+00 : f32
    %81 = vector.broadcast %cst_50 : f32 to vector<2x96xf32>
    %82 = arith.addf %81, %80 : vector<2x96xf32>
    %83 = arith.divf %81, %82 : vector<2x96xf32>
    %84 = vector.extract_strided_slice %83 {offsets = [0, 0], sizes = [2, 32], strides = [1, 1]} : vector<2x96xf32> to vector<2x32xf32>
    %85 = vector.extract_strided_slice %83 {offsets = [0, 32], sizes = [2, 32], strides = [1, 1]} : vector<2x96xf32> to vector<2x32xf32>
    %86 = vector.extract_strided_slice %83 {offsets = [0, 64], sizes = [2, 32], strides = [1, 1]} : vector<2x96xf32> to vector<2x32xf32>
    %87 = vector.extract_strided_slice %75 {offsets = [0, 96], sizes = [2, 32], strides = [1, 1]} : vector<2x128xf32> to vector<2x32xf32>
    %88 = math.tanh %87 : vector<2x32xf32>
    %89 = arith.mulf %77, %84 : vector<2x32xf32>
    %90 = arith.mulf %85, %88 : vector<2x32xf32>
    %91 = arith.addf %89, %90 : vector<2x32xf32>
    %92 = math.tanh %91 : vector<2x32xf32>
    %93 = arith.mulf %86, %92 : vector<2x32xf32>
    %c0_51 = arith.constant 0 : index
    %c0_52 = arith.constant 0 : index
    %c0_53 = arith.constant 0 : index
    %94 = vector.load %arg11[%c0_51, %c0_52, %c0_53] : memref<2x2x32xf32, #tpu.memory_space<vmem>>, vector<1x2x32xf32>
    %95 = vector.shape_cast %94 : vector<1x2x32xf32> to vector<2x32xf32>
    %96 = vector.shape_cast %91 : vector<2x32xf32> to vector<1x2x32xf32>
    tpu.vector_store %arg11[%c0_51, %c0_52, %c0_53], %96 {strides = array<i32>} : memref<2x2x32xf32, #tpu.memory_space<vmem>>, vector<1x2x32xf32>,
    %c0_54 = arith.constant 0 : index
    %c0_55 = arith.constant 0 : index
    %c0_56 = arith.constant 0 : index
    %97 = vector.load %arg12[%c0_54, %c0_55, %c0_56] : memref<2x2x32xf32, #tpu.memory_space<vmem>>, vector<1x2x32xf32>
    %98 = vector.shape_cast %97 : vector<1x2x32xf32> to vector<2x32xf32>
    %99 = vector.shape_cast %93 : vector<2x32xf32> to vector<1x2x32xf32>
    tpu.vector_store %arg12[%c0_54, %c0_55, %c0_56], %99 {strides = array<i32>} : memref<2x2x32xf32, #tpu.memory_space<vmem>>, vector<1x2x32xf32>,
    %c1_57 = arith.constant 1 : index
    %c0_58 = arith.constant 0 : index
    %c0_59 = arith.constant 0 : index
    %100 = vector.load %arg12[%c1_57, %c0_58, %c0_59] : memref<2x2x32xf32, #tpu.memory_space<vmem>>, vector<1x2x32xf32>
    %101 = vector.shape_cast %100 : vector<1x2x32xf32> to vector<2x32xf32>
    %102 = tpu.concatenate %93, %101 in 1 : vector<2x32xf32>, vector<2x32xf32> -> vector<2x64xf32>
    %c0_60 = arith.constant 0 : index
    %c0_61 = arith.constant 0 : index
    %103 = vector.load %arg14[%c0_60, %c0_61] : memref<64x128xf32, #tpu.memory_space<vmem>>, vector<64x128xf32>
    %cst_62 = arith.constant dense<0.000000e+00> : vector<2x128xf32>
    %104 = tpu.matmul %102, %103, %cst_62 {dimension_numbers = #tpu.dot_dimension_numbers<[1], [0], [0], [1], [0, 0, 1, 1], [], []>} : vector<2x64xf32>, vector<64x128xf32>, vector<2x128xf32> -> vector<2x128xf32>
    %c0_63 = arith.constant 0 : index
    %c0_64 = arith.constant 0 : index
    %105 = vector.load %arg15[%c0_63, %c0_64] : memref<1x128xf32, #tpu.memory_space<vmem>>, vector<1x128xf32>
    %106 = vector.broadcast %105 : vector<1x128xf32> to vector<2x128xf32>
    %107 = arith.addf %104, %106 : vector<2x128xf32>
    %c1_65 = arith.constant 1 : index
    %c0_66 = arith.constant 0 : index
    %c0_67 = arith.constant 0 : index
    %108 = vector.load %arg11[%c1_65, %c0_66, %c0_67] : memref<2x2x32xf32, #tpu.memory_space<vmem>>, vector<1x2x32xf32>
    %109 = vector.shape_cast %108 : vector<1x2x32xf32> to vector<2x32xf32>
    %110 = vector.extract_strided_slice %107 {offsets = [0, 0], sizes = [2, 96], strides = [1, 1]} : vector<2x128xf32> to vector<2x96xf32>
    %111 = arith.negf %110 : vector<2x96xf32>
    %112 = math.exp %111 : vector<2x96xf32>
    %cst_68 = arith.constant 1.000000e+00 : f32
    %113 = vector.broadcast %cst_68 : f32 to vector<2x96xf32>
    %114 = arith.addf %113, %112 : vector<2x96xf32>
    %115 = arith.divf %113, %114 : vector<2x96xf32>
    %116 = vector.extract_strided_slice %115 {offsets = [0, 0], sizes = [2, 32], strides = [1, 1]} : vector<2x96xf32> to vector<2x32xf32>
    %117 = vector.extract_strided_slice %115 {offsets = [0, 32], sizes = [2, 32], strides = [1, 1]} : vector<2x96xf32> to vector<2x32xf32>
    %118 = vector.extract_strided_slice %115 {offsets = [0, 64], sizes = [2, 32], strides = [1, 1]} : vector<2x96xf32> to vector<2x32xf32>
    %119 = vector.extract_strided_slice %107 {offsets = [0, 96], sizes = [2, 32], strides = [1, 1]} : vector<2x128xf32> to vector<2x32xf32>
    %120 = math.tanh %119 : vector<2x32xf32>
    %121 = arith.mulf %109, %116 : vector<2x32xf32>
    %122 = arith.mulf %117, %120 : vector<2x32xf32>
    %123 = arith.addf %121, %122 : vector<2x32xf32>
    %124 = math.tanh %123 : vector<2x32xf32>
    %125 = arith.mulf %118, %124 : vector<2x32xf32>
    %c1_69 = arith.constant 1 : index
    %c0_70 = arith.constant 0 : index
    %c0_71 = arith.constant 0 : index
    %126 = vector.load %arg11[%c1_69, %c0_70, %c0_71] : memref<2x2x32xf32, #tpu.memory_space<vmem>>, vector<1x2x32xf32>
    %127 = vector.shape_cast %126 : vector<1x2x32xf32> to vector<2x32xf32>
    %128 = vector.shape_cast %123 : vector<2x32xf32> to vector<1x2x32xf32>
    tpu.vector_store %arg11[%c1_69, %c0_70, %c0_71], %128 {strides = array<i32>} : memref<2x2x32xf32, #tpu.memory_space<vmem>>, vector<1x2x32xf32>,
    %c1_72 = arith.constant 1 : index
    %c0_73 = arith.constant 0 : index
    %c0_74 = arith.constant 0 : index
    %129 = vector.load %arg12[%c1_72, %c0_73, %c0_74] : memref<2x2x32xf32, #tpu.memory_space<vmem>>, vector<1x2x32xf32>
    %130 = vector.shape_cast %129 : vector<1x2x32xf32> to vector<2x32xf32>
    %131 = vector.shape_cast %125 : vector<2x32xf32> to vector<1x2x32xf32>
    tpu.vector_store %arg12[%c1_72, %c0_73, %c0_74], %131 {strides = array<i32>} : memref<2x2x32xf32, #tpu.memory_space<vmem>>, vector<1x2x32xf32>,
    %c1_75 = arith.constant 1 : index
    %c0_76 = arith.constant 0 : index
    %c0_77 = arith.constant 0 : index
    %132 = vector.load %arg8[%c1_75, %c0_76, %c0_77] : memref<4x2x32xf32, #tpu.memory_space<vmem>>, vector<1x2x32xf32>
    %133 = vector.shape_cast %132 : vector<1x2x32xf32> to vector<2x32xf32>
    %134 = vector.shape_cast %125 : vector<2x32xf32> to vector<1x2x32xf32>
    tpu.vector_store %arg8[%c1_75, %c0_76, %c0_77], %134 {strides = array<i32>} : memref<4x2x32xf32, #tpu.memory_space<vmem>>, vector<1x2x32xf32>,
    %c2 = arith.constant 2 : index
    %c0_78 = arith.constant 0 : index
    %c0_79 = arith.constant 0 : index
    %135 = vector.load %arg4[%c2, %c0_78, %c0_79] : memref<4x2x128xf32, #tpu.memory_space<vmem>>, vector<1x2x128xf32>
    %136 = vector.shape_cast %135 : vector<1x2x128xf32> to vector<2x128xf32>
    %c0_80 = arith.constant 0 : index
    %c0_81 = arith.constant 0 : index
    %c0_82 = arith.constant 0 : index
    %137 = vector.load %arg12[%c0_80, %c0_81, %c0_82] : memref<2x2x32xf32, #tpu.memory_space<vmem>>, vector<1x2x32xf32>
    %138 = vector.shape_cast %137 : vector<1x2x32xf32> to vector<2x32xf32>
    %c0_83 = arith.constant 0 : index
    %c0_84 = arith.constant 0 : index
    %139 = vector.load %arg13[%c0_83, %c0_84] : memref<32x128xf32, #tpu.memory_space<vmem>>, vector<32x128xf32>
    %cst_85 = arith.constant dense<0.000000e+00> : vector<2x128xf32>
    %140 = tpu.matmul %138, %139, %cst_85 {dimension_numbers = #tpu.dot_dimension_numbers<[1], [0], [0], [1], [0, 0, 1, 1], [], []>} : vector<2x32xf32>, vector<32x128xf32>, vector<2x128xf32> -> vector<2x128xf32>
    %141 = arith.addf %136, %140 : vector<2x128xf32>
    %c0_86 = arith.constant 0 : index
    %c0_87 = arith.constant 0 : index
    %c0_88 = arith.constant 0 : index
    %142 = vector.load %arg11[%c0_86, %c0_87, %c0_88] : memref<2x2x32xf32, #tpu.memory_space<vmem>>, vector<1x2x32xf32>
    %143 = vector.shape_cast %142 : vector<1x2x32xf32> to vector<2x32xf32>
    %144 = vector.extract_strided_slice %141 {offsets = [0, 0], sizes = [2, 96], strides = [1, 1]} : vector<2x128xf32> to vector<2x96xf32>
    %145 = arith.negf %144 : vector<2x96xf32>
    %146 = math.exp %145 : vector<2x96xf32>
    %cst_89 = arith.constant 1.000000e+00 : f32
    %147 = vector.broadcast %cst_89 : f32 to vector<2x96xf32>
    %148 = arith.addf %147, %146 : vector<2x96xf32>
    %149 = arith.divf %147, %148 : vector<2x96xf32>
    %150 = vector.extract_strided_slice %149 {offsets = [0, 0], sizes = [2, 32], strides = [1, 1]} : vector<2x96xf32> to vector<2x32xf32>
    %151 = vector.extract_strided_slice %149 {offsets = [0, 32], sizes = [2, 32], strides = [1, 1]} : vector<2x96xf32> to vector<2x32xf32>
    %152 = vector.extract_strided_slice %149 {offsets = [0, 64], sizes = [2, 32], strides = [1, 1]} : vector<2x96xf32> to vector<2x32xf32>
    %153 = vector.extract_strided_slice %141 {offsets = [0, 96], sizes = [2, 32], strides = [1, 1]} : vector<2x128xf32> to vector<2x32xf32>
    %154 = math.tanh %153 : vector<2x32xf32>
    %155 = arith.mulf %143, %150 : vector<2x32xf32>
    %156 = arith.mulf %151, %154 : vector<2x32xf32>
    %157 = arith.addf %155, %156 : vector<2x32xf32>
    %158 = math.tanh %157 : vector<2x32xf32>
    %159 = arith.mulf %152, %158 : vector<2x32xf32>
    %c0_90 = arith.constant 0 : index
    %c0_91 = arith.constant 0 : index
    %c0_92 = arith.constant 0 : index
    %160 = vector.load %arg11[%c0_90, %c0_91, %c0_92] : memref<2x2x32xf32, #tpu.memory_space<vmem>>, vector<1x2x32xf32>
    %161 = vector.shape_cast %160 : vector<1x2x32xf32> to vector<2x32xf32>
    %162 = vector.shape_cast %157 : vector<2x32xf32> to vector<1x2x32xf32>
    tpu.vector_store %arg11[%c0_90, %c0_91, %c0_92], %162 {strides = array<i32>} : memref<2x2x32xf32, #tpu.memory_space<vmem>>, vector<1x2x32xf32>,
    %c0_93 = arith.constant 0 : index
    %c0_94 = arith.constant 0 : index
    %c0_95 = arith.constant 0 : index
    %163 = vector.load %arg12[%c0_93, %c0_94, %c0_95] : memref<2x2x32xf32, #tpu.memory_space<vmem>>, vector<1x2x32xf32>
    %164 = vector.shape_cast %163 : vector<1x2x32xf32> to vector<2x32xf32>
    %165 = vector.shape_cast %159 : vector<2x32xf32> to vector<1x2x32xf32>
    tpu.vector_store %arg12[%c0_93, %c0_94, %c0_95], %165 {strides = array<i32>} : memref<2x2x32xf32, #tpu.memory_space<vmem>>, vector<1x2x32xf32>,
    %c1_96 = arith.constant 1 : index
    %c0_97 = arith.constant 0 : index
    %c0_98 = arith.constant 0 : index
    %166 = vector.load %arg12[%c1_96, %c0_97, %c0_98] : memref<2x2x32xf32, #tpu.memory_space<vmem>>, vector<1x2x32xf32>
    %167 = vector.shape_cast %166 : vector<1x2x32xf32> to vector<2x32xf32>
    %168 = tpu.concatenate %159, %167 in 1 : vector<2x32xf32>, vector<2x32xf32> -> vector<2x64xf32>
    %c0_99 = arith.constant 0 : index
    %c0_100 = arith.constant 0 : index
    %169 = vector.load %arg14[%c0_99, %c0_100] : memref<64x128xf32, #tpu.memory_space<vmem>>, vector<64x128xf32>
    %cst_101 = arith.constant dense<0.000000e+00> : vector<2x128xf32>
    %170 = tpu.matmul %168, %169, %cst_101 {dimension_numbers = #tpu.dot_dimension_numbers<[1], [0], [0], [1], [0, 0, 1, 1], [], []>} : vector<2x64xf32>, vector<64x128xf32>, vector<2x128xf32> -> vector<2x128xf32>
    %c0_102 = arith.constant 0 : index
    %c0_103 = arith.constant 0 : index
    %171 = vector.load %arg15[%c0_102, %c0_103] : memref<1x128xf32, #tpu.memory_space<vmem>>, vector<1x128xf32>
    %172 = vector.broadcast %171 : vector<1x128xf32> to vector<2x128xf32>
    %173 = arith.addf %170, %172 : vector<2x128xf32>
    %c1_104 = arith.constant 1 : index
    %c0_105 = arith.constant 0 : index
    %c0_106 = arith.constant 0 : index
    %174 = vector.load %arg11[%c1_104, %c0_105, %c0_106] : memref<2x2x32xf32, #tpu.memory_space<vmem>>, vector<1x2x32xf32>
    %175 = vector.shape_cast %174 : vector<1x2x32xf32> to vector<2x32xf32>
    %176 = vector.extract_strided_slice %173 {offsets = [0, 0], sizes = [2, 96], strides = [1, 1]} : vector<2x128xf32> to vector<2x96xf32>
    %177 = arith.negf %176 : vector<2x96xf32>
    %178 = math.exp %177 : vector<2x96xf32>
    %cst_107 = arith.constant 1.000000e+00 : f32
    %179 = vector.broadcast %cst_107 : f32 to vector<2x96xf32>
    %180 = arith.addf %179, %178 : vector<2x96xf32>
    %181 = arith.divf %179, %180 : vector<2x96xf32>
    %182 = vector.extract_strided_slice %181 {offsets = [0, 0], sizes = [2, 32], strides = [1, 1]} : vector<2x96xf32> to vector<2x32xf32>
    %183 = vector.extract_strided_slice %181 {offsets = [0, 32], sizes = [2, 32], strides = [1, 1]} : vector<2x96xf32> to vector<2x32xf32>
    %184 = vector.extract_strided_slice %181 {offsets = [0, 64], sizes = [2, 32], strides = [1, 1]} : vector<2x96xf32> to vector<2x32xf32>
    %185 = vector.extract_strided_slice %173 {offsets = [0, 96], sizes = [2, 32], strides = [1, 1]} : vector<2x128xf32> to vector<2x32xf32>
    %186 = math.tanh %185 : vector<2x32xf32>
    %187 = arith.mulf %175, %182 : vector<2x32xf32>
    %188 = arith.mulf %183, %186 : vector<2x32xf32>
    %189 = arith.addf %187, %188 : vector<2x32xf32>
    %190 = math.tanh %189 : vector<2x32xf32>
    %191 = arith.mulf %184, %190 : vector<2x32xf32>
    %c1_108 = arith.constant 1 : index
    %c0_109 = arith.constant 0 : index
    %c0_110 = arith.constant 0 : index
    %192 = vector.load %arg11[%c1_108, %c0_109, %c0_110] : memref<2x2x32xf32, #tpu.memory_space<vmem>>, vector<1x2x32xf32>
    %193 = vector.shape_cast %192 : vector<1x2x32xf32> to vector<2x32xf32>
    %194 = vector.shape_cast %189 : vector<2x32xf32> to vector<1x2x32xf32>
    tpu.vector_store %arg11[%c1_108, %c0_109, %c0_110], %194 {strides = array<i32>} : memref<2x2x32xf32, #tpu.memory_space<vmem>>, vector<1x2x32xf32>,
    %c1_111 = arith.constant 1 : index
    %c0_112 = arith.constant 0 : index
    %c0_113 = arith.constant 0 : index
    %195 = vector.load %arg12[%c1_111, %c0_112, %c0_113] : memref<2x2x32xf32, #tpu.memory_space<vmem>>, vector<1x2x32xf32>
    %196 = vector.shape_cast %195 : vector<1x2x32xf32> to vector<2x32xf32>
    %197 = vector.shape_cast %191 : vector<2x32xf32> to vector<1x2x32xf32>
    tpu.vector_store %arg12[%c1_111, %c0_112, %c0_113], %197 {strides = array<i32>} : memref<2x2x32xf32, #tpu.memory_space<vmem>>, vector<1x2x32xf32>,
    %c2_114 = arith.constant 2 : index
    %c0_115 = arith.constant 0 : index
    %c0_116 = arith.constant 0 : index
    %198 = vector.load %arg8[%c2_114, %c0_115, %c0_116] : memref<4x2x32xf32, #tpu.memory_space<vmem>>, vector<1x2x32xf32>
    %199 = vector.shape_cast %198 : vector<1x2x32xf32> to vector<2x32xf32>
    %200 = vector.shape_cast %191 : vector<2x32xf32> to vector<1x2x32xf32>
    tpu.vector_store %arg8[%c2_114, %c0_115, %c0_116], %200 {strides = array<i32>} : memref<4x2x32xf32, #tpu.memory_space<vmem>>, vector<1x2x32xf32>,
    %c3 = arith.constant 3 : index
    %c0_117 = arith.constant 0 : index
    %c0_118 = arith.constant 0 : index
    %201 = vector.load %arg4[%c3, %c0_117, %c0_118] : memref<4x2x128xf32, #tpu.memory_space<vmem>>, vector<1x2x128xf32>
    %202 = vector.shape_cast %201 : vector<1x2x128xf32> to vector<2x128xf32>
    %c0_119 = arith.constant 0 : index
    %c0_120 = arith.constant 0 : index
    %c0_121 = arith.constant 0 : index
    %203 = vector.load %arg12[%c0_119, %c0_120, %c0_121] : memref<2x2x32xf32, #tpu.memory_space<vmem>>, vector<1x2x32xf32>
    %204 = vector.shape_cast %203 : vector<1x2x32xf32> to vector<2x32xf32>
    %c0_122 = arith.constant 0 : index
    %c0_123 = arith.constant 0 : index
    %205 = vector.load %arg13[%c0_122, %c0_123] : memref<32x128xf32, #tpu.memory_space<vmem>>, vector<32x128xf32>
    %cst_124 = arith.constant dense<0.000000e+00> : vector<2x128xf32>
    %206 = tpu.matmul %204, %205, %cst_124 {dimension_numbers = #tpu.dot_dimension_numbers<[1], [0], [0], [1], [0, 0, 1, 1], [], []>} : vector<2x32xf32>, vector<32x128xf32>, vector<2x128xf32> -> vector<2x128xf32>
    %207 = arith.addf %202, %206 : vector<2x128xf32>
    %c0_125 = arith.constant 0 : index
    %c0_126 = arith.constant 0 : index
    %c0_127 = arith.constant 0 : index
    %208 = vector.load %arg11[%c0_125, %c0_126, %c0_127] : memref<2x2x32xf32, #tpu.memory_space<vmem>>, vector<1x2x32xf32>
    %209 = vector.shape_cast %208 : vector<1x2x32xf32> to vector<2x32xf32>
    %210 = vector.extract_strided_slice %207 {offsets = [0, 0], sizes = [2, 96], strides = [1, 1]} : vector<2x128xf32> to vector<2x96xf32>
    %211 = arith.negf %210 : vector<2x96xf32>
    %212 = math.exp %211 : vector<2x96xf32>
    %cst_128 = arith.constant 1.000000e+00 : f32
    %213 = vector.broadcast %cst_128 : f32 to vector<2x96xf32>
    %214 = arith.addf %213, %212 : vector<2x96xf32>
    %215 = arith.divf %213, %214 : vector<2x96xf32>
    %216 = vector.extract_strided_slice %215 {offsets = [0, 0], sizes = [2, 32], strides = [1, 1]} : vector<2x96xf32> to vector<2x32xf32>
    %217 = vector.extract_strided_slice %215 {offsets = [0, 32], sizes = [2, 32], strides = [1, 1]} : vector<2x96xf32> to vector<2x32xf32>
    %218 = vector.extract_strided_slice %215 {offsets = [0, 64], sizes = [2, 32], strides = [1, 1]} : vector<2x96xf32> to vector<2x32xf32>
    %219 = vector.extract_strided_slice %207 {offsets = [0, 96], sizes = [2, 32], strides = [1, 1]} : vector<2x128xf32> to vector<2x32xf32>
    %220 = math.tanh %219 : vector<2x32xf32>
    %221 = arith.mulf %209, %216 : vector<2x32xf32>
    %222 = arith.mulf %217, %220 : vector<2x32xf32>
    %223 = arith.addf %221, %222 : vector<2x32xf32>
    %224 = math.tanh %223 : vector<2x32xf32>
    %225 = arith.mulf %218, %224 : vector<2x32xf32>
    %c0_129 = arith.constant 0 : index
    %c0_130 = arith.constant 0 : index
    %c0_131 = arith.constant 0 : index
    %226 = vector.load %arg11[%c0_129, %c0_130, %c0_131] : memref<2x2x32xf32, #tpu.memory_space<vmem>>, vector<1x2x32xf32>
    %227 = vector.shape_cast %226 : vector<1x2x32xf32> to vector<2x32xf32>
    %228 = vector.shape_cast %223 : vector<2x32xf32> to vector<1x2x32xf32>
    tpu.vector_store %arg11[%c0_129, %c0_130, %c0_131], %228 {strides = array<i32>} : memref<2x2x32xf32, #tpu.memory_space<vmem>>, vector<1x2x32xf32>,
    %c0_132 = arith.constant 0 : index
    %c0_133 = arith.constant 0 : index
    %c0_134 = arith.constant 0 : index
    %229 = vector.load %arg12[%c0_132, %c0_133, %c0_134] : memref<2x2x32xf32, #tpu.memory_space<vmem>>, vector<1x2x32xf32>
    %230 = vector.shape_cast %229 : vector<1x2x32xf32> to vector<2x32xf32>
    %231 = vector.shape_cast %225 : vector<2x32xf32> to vector<1x2x32xf32>
    tpu.vector_store %arg12[%c0_132, %c0_133, %c0_134], %231 {strides = array<i32>} : memref<2x2x32xf32, #tpu.memory_space<vmem>>, vector<1x2x32xf32>,
    %c1_135 = arith.constant 1 : index
    %c0_136 = arith.constant 0 : index
    %c0_137 = arith.constant 0 : index
    %232 = vector.load %arg12[%c1_135, %c0_136, %c0_137] : memref<2x2x32xf32, #tpu.memory_space<vmem>>, vector<1x2x32xf32>
    %233 = vector.shape_cast %232 : vector<1x2x32xf32> to vector<2x32xf32>
    %234 = tpu.concatenate %225, %233 in 1 : vector<2x32xf32>, vector<2x32xf32> -> vector<2x64xf32>
    %c0_138 = arith.constant 0 : index
    %c0_139 = arith.constant 0 : index
    %235 = vector.load %arg14[%c0_138, %c0_139] : memref<64x128xf32, #tpu.memory_space<vmem>>, vector<64x128xf32>
    %cst_140 = arith.constant dense<0.000000e+00> : vector<2x128xf32>
    %236 = tpu.matmul %234, %235, %cst_140 {dimension_numbers = #tpu.dot_dimension_numbers<[1], [0], [0], [1], [0, 0, 1, 1], [], []>} : vector<2x64xf32>, vector<64x128xf32>, vector<2x128xf32> -> vector<2x128xf32>
    %c0_141 = arith.constant 0 : index
    %c0_142 = arith.constant 0 : index
    %237 = vector.load %arg15[%c0_141, %c0_142] : memref<1x128xf32, #tpu.memory_space<vmem>>, vector<1x128xf32>
    %238 = vector.broadcast %237 : vector<1x128xf32> to vector<2x128xf32>
    %239 = arith.addf %236, %238 : vector<2x128xf32>
    %c1_143 = arith.constant 1 : index
    %c0_144 = arith.constant 0 : index
    %c0_145 = arith.constant 0 : index
    %240 = vector.load %arg11[%c1_143, %c0_144, %c0_145] : memref<2x2x32xf32, #tpu.memory_space<vmem>>, vector<1x2x32xf32>
    %241 = vector.shape_cast %240 : vector<1x2x32xf32> to vector<2x32xf32>
    %242 = vector.extract_strided_slice %239 {offsets = [0, 0], sizes = [2, 96], strides = [1, 1]} : vector<2x128xf32> to vector<2x96xf32>
    %243 = arith.negf %242 : vector<2x96xf32>
    %244 = math.exp %243 : vector<2x96xf32>
    %cst_146 = arith.constant 1.000000e+00 : f32
    %245 = vector.broadcast %cst_146 : f32 to vector<2x96xf32>
    %246 = arith.addf %245, %244 : vector<2x96xf32>
    %247 = arith.divf %245, %246 : vector<2x96xf32>
    %248 = vector.extract_strided_slice %247 {offsets = [0, 0], sizes = [2, 32], strides = [1, 1]} : vector<2x96xf32> to vector<2x32xf32>
    %249 = vector.extract_strided_slice %247 {offsets = [0, 32], sizes = [2, 32], strides = [1, 1]} : vector<2x96xf32> to vector<2x32xf32>
    %250 = vector.extract_strided_slice %247 {offsets = [0, 64], sizes = [2, 32], strides = [1, 1]} : vector<2x96xf32> to vector<2x32xf32>
    %251 = vector.extract_strided_slice %239 {offsets = [0, 96], sizes = [2, 32], strides = [1, 1]} : vector<2x128xf32> to vector<2x32xf32>
    %252 = math.tanh %251 : vector<2x32xf32>
    %253 = arith.mulf %241, %248 : vector<2x32xf32>
    %254 = arith.mulf %249, %252 : vector<2x32xf32>
    %255 = arith.addf %253, %254 : vector<2x32xf32>
    %256 = math.tanh %255 : vector<2x32xf32>
    %257 = arith.mulf %250, %256 : vector<2x32xf32>
    %c1_147 = arith.constant 1 : index
    %c0_148 = arith.constant 0 : index
    %c0_149 = arith.constant 0 : index
    %258 = vector.load %arg11[%c1_147, %c0_148, %c0_149] : memref<2x2x32xf32, #tpu.memory_space<vmem>>, vector<1x2x32xf32>
    %259 = vector.shape_cast %258 : vector<1x2x32xf32> to vector<2x32xf32>
    %260 = vector.shape_cast %255 : vector<2x32xf32> to vector<1x2x32xf32>
    tpu.vector_store %arg11[%c1_147, %c0_148, %c0_149], %260 {strides = array<i32>} : memref<2x2x32xf32, #tpu.memory_space<vmem>>, vector<1x2x32xf32>,
    %c1_150 = arith.constant 1 : index
    %c0_151 = arith.constant 0 : index
    %c0_152 = arith.constant 0 : index
    %261 = vector.load %arg12[%c1_150, %c0_151, %c0_152] : memref<2x2x32xf32, #tpu.memory_space<vmem>>, vector<1x2x32xf32>
    %262 = vector.shape_cast %261 : vector<1x2x32xf32> to vector<2x32xf32>
    %263 = vector.shape_cast %257 : vector<2x32xf32> to vector<1x2x32xf32>
    tpu.vector_store %arg12[%c1_150, %c0_151, %c0_152], %263 {strides = array<i32>} : memref<2x2x32xf32, #tpu.memory_space<vmem>>, vector<1x2x32xf32>,
    %c3_153 = arith.constant 3 : index
    %c0_154 = arith.constant 0 : index
    %c0_155 = arith.constant 0 : index
    %264 = vector.load %arg8[%c3_153, %c0_154, %c0_155] : memref<4x2x32xf32, #tpu.memory_space<vmem>>, vector<1x2x32xf32>
    %265 = vector.shape_cast %264 : vector<1x2x32xf32> to vector<2x32xf32>
    %266 = vector.shape_cast %257 : vector<2x32xf32> to vector<1x2x32xf32>
    tpu.vector_store %arg8[%c3_153, %c0_154, %c0_155], %266 {strides = array<i32>} : memref<4x2x32xf32, #tpu.memory_space<vmem>>, vector<1x2x32xf32>,
    %c1_i32 = arith.constant 1 : i32
    %267 = arith.cmpi eq, %arg1, %c1_i32 : i32
    %268 = arith.extui %267 : i1 to i32
    %c0_i32_156 = arith.constant 0 : i32
    %269 = arith.cmpi ne, %268, %c0_i32_156 : i32
    scf.if %269 {
      %c0_157 = arith.constant 0 : index
      %c0_158 = arith.constant 0 : index
      %c0_159 = arith.constant 0 : index
      %270 = vector.load %arg11[%c0_157, %c0_158, %c0_159] : memref<2x2x32xf32, #tpu.memory_space<vmem>>, vector<2x2x32xf32>
      %c0_160 = arith.constant 0 : index
      %c0_161 = arith.constant 0 : index
      %c0_162 = arith.constant 0 : index
      %271 = vector.load %arg9[%c0_160, %c0_161, %c0_162] : memref<2x2x32xf32, #tpu.memory_space<vmem>>, vector<2x2x32xf32>
      tpu.vector_store %arg9[%c0_160, %c0_161, %c0_162], %270 {strides = array<i32>} : memref<2x2x32xf32, #tpu.memory_space<vmem>>, vector<2x2x32xf32>,
      %c0_163 = arith.constant 0 : index
      %c0_164 = arith.constant 0 : index
      %c0_165 = arith.constant 0 : index
      %272 = vector.load %arg12[%c0_163, %c0_164, %c0_165] : memref<2x2x32xf32, #tpu.memory_space<vmem>>, vector<2x2x32xf32>
      %c0_166 = arith.constant 0 : index
      %c0_167 = arith.constant 0 : index
      %c0_168 = arith.constant 0 : index
      %273 = vector.load %arg10[%c0_166, %c0_167, %c0_168] : memref<2x2x32xf32, #tpu.memory_space<vmem>>, vector<2x2x32xf32>
      tpu.vector_store %arg10[%c0_166, %c0_167, %c0_168], %272 {strides = array<i32>} : memref<2x2x32xf32, #tpu.memory_space<vmem>>, vector<2x2x32xf32>,
    } else {
    }
    return
  }
  func.func @transform_0(%arg0: i32, %arg1: i32) -> (i32, i32, i32) {
    %c0_i32 = arith.constant 0 : i32
    %c0_i32_0 = arith.constant 0 : i32
    %c0_i32_1 = arith.constant 0 : i32
    return %c0_i32, %arg0, %c0_i32_0 : i32, i32, i32
  }
  func.func @transform_1(%arg0: i32, %arg1: i32) -> (i32, i32, i32) {
    %c0_i32 = arith.constant 0 : i32
    %c0_i32_0 = arith.constant 0 : i32
    %c0_i32_1 = arith.constant 0 : i32
    return %c0_i32, %arg0, %c0_i32_0 : i32, i32, i32
  }
  func.func @transform_2(%arg0: i32, %arg1: i32) -> (i32, i32, i32) {
    %c0_i32 = arith.constant 0 : i32
    %c0_i32_0 = arith.constant 0 : i32
    return %arg1, %arg0, %c0_i32 : i32, i32, i32
  }
  func.func @transform_6(%arg0: i32, %arg1: i32) -> (i32, i32, i32) {
    %c0_i32 = arith.constant 0 : i32
    %c0_i32_0 = arith.constant 0 : i32
    return %arg1, %arg0, %c0_i32 : i32, i32, i32
  }
  func.func @transform_7(%arg0: i32, %arg1: i32) -> (i32, i32, i32) {
    %c0_i32 = arith.constant 0 : i32
    %c0_i32_0 = arith.constant 0 : i32
    %c0_i32_1 = arith.constant 0 : i32
    return %c0_i32, %arg0, %c0_i32_0 : i32, i32, i32
  }
  func.func @transform_8(%arg0: i32, %arg1: i32) -> (i32, i32, i32) {
    %c0_i32 = arith.constant 0 : i32
    %c0_i32_0 = arith.constant 0 : i32
    %c0_i32_1 = arith.constant 0 : i32
    return %c0_i32, %arg0, %c0_i32_0 : i32, i32, i32
  }
}

module attributes {stable_mosaic.version = 11 : i64} {
  func.func @_classifier_kernel(%arg0: i32, %arg1: i32, %arg2: memref<16x32xf32, #tpu.memory_space<vmem>>, %arg3: memref<32x128xf32, #tpu.memory_space<vmem>>, %arg4: memref<1x128xf32, #tpu.memory_space<vmem>>, %arg5: memref<128x64xf32, #tpu.memory_space<vmem>>, %arg6: memref<1x64xf32, #tpu.memory_space<vmem>>, %arg7: memref<16x64xf32, #tpu.memory_space<vmem>>) attributes {dimension_semantics = [#tpu.dimension_semantics<parallel>, #tpu.dimension_semantics<parallel>], iteration_bounds = array<i64: 1, 1>, scalar_prefetch = 0 : i64, scratch_operands = 0 : i64, tpu.core_type = #tpu.core_type<tc>, window_params = [{transform_indices = @transform_0, window_bounds = array<i64: 16, 32>}, {pipeline_mode = #tpu.pipeline_mode<synchronous>, transform_indices = @transform_1, window_bounds = array<i64: 32, 128>}, {pipeline_mode = #tpu.pipeline_mode<synchronous>, transform_indices = @transform_2, window_bounds = array<i64: 1, 128>}, {transform_indices = @transform_3, window_bounds = array<i64: 128, 64>}, {transform_indices = @transform_4, window_bounds = array<i64: 1, 64>}, {transform_indices = @transform_5, window_bounds = array<i64: 16, 64>}]} {
    %c0 = arith.constant 0 : index
    %c0_0 = arith.constant 0 : index
    %0 = vector.load %arg2[%c0, %c0_0] : memref<16x32xf32, #tpu.memory_space<vmem>>, vector<16x32xf32>
    %c0_1 = arith.constant 0 : index
    %c0_2 = arith.constant 0 : index
    %1 = vector.load %arg3[%c0_1, %c0_2] : memref<32x128xf32, #tpu.memory_space<vmem>>, vector<32x128xf32>
    %cst = arith.constant dense<0.000000e+00> : vector<16x128xf32>
    %2 = tpu.matmul %0, %1, %cst {dimension_numbers = #tpu.dot_dimension_numbers<[1], [0], [0], [1], [0, 0, 1, 1], [], []>} : vector<16x32xf32>, vector<32x128xf32>, vector<16x128xf32> -> vector<16x128xf32>
    %c0_3 = arith.constant 0 : index
    %c0_4 = arith.constant 0 : index
    %3 = vector.load %arg4[%c0_3, %c0_4] : memref<1x128xf32, #tpu.memory_space<vmem>>, vector<1x128xf32>
    %4 = vector.broadcast %3 : vector<1x128xf32> to vector<16x128xf32>
    %5 = arith.addf %2, %4 : vector<16x128xf32>
    %c0_5 = arith.constant 0 : index
    %c0_6 = arith.constant 0 : index
    %6 = vector.load %arg5[%c0_5, %c0_6] : memref<128x64xf32, #tpu.memory_space<vmem>>, vector<128x64xf32>
    %cst_7 = arith.constant dense<0.000000e+00> : vector<16x64xf32>
    %7 = tpu.matmul %5, %6, %cst_7 {dimension_numbers = #tpu.dot_dimension_numbers<[1], [0], [0], [1], [0, 0, 1, 1], [], []>} : vector<16x128xf32>, vector<128x64xf32>, vector<16x64xf32> -> vector<16x64xf32>
    %c0_8 = arith.constant 0 : index
    %c0_9 = arith.constant 0 : index
    %8 = vector.load %arg6[%c0_8, %c0_9] : memref<1x64xf32, #tpu.memory_space<vmem>>, vector<1x64xf32>
    %9 = vector.broadcast %8 : vector<1x64xf32> to vector<16x64xf32>
    %10 = arith.addf %7, %9 : vector<16x64xf32>
    %c0_10 = arith.constant 0 : index
    %c0_11 = arith.constant 0 : index
    %11 = vector.load %arg7[%c0_10, %c0_11] : memref<16x64xf32, #tpu.memory_space<vmem>>, vector<16x64xf32>
    tpu.vector_store %arg7[%c0_10, %c0_11], %10 {strides = array<i32>} : memref<16x64xf32, #tpu.memory_space<vmem>>, vector<16x64xf32>,
    return
  }
  func.func @transform_0(%arg0: i32, %arg1: i32) -> (i32, i32) {
    %c0_i32 = arith.constant 0 : i32
    %c0_i32_0 = arith.constant 0 : i32
    return %arg0, %c0_i32 : i32, i32
  }
  func.func @transform_1(%arg0: i32, %arg1: i32) -> (i32, i32) {
    %c0_i32 = arith.constant 0 : i32
    %c0_i32_0 = arith.constant 0 : i32
    %c0_i32_1 = arith.constant 0 : i32
    return %c0_i32, %c0_i32_0 : i32, i32
  }
  func.func @transform_2(%arg0: i32, %arg1: i32) -> (i32, i32) {
    %c0_i32 = arith.constant 0 : i32
    %c0_i32_0 = arith.constant 0 : i32
    %c0_i32_1 = arith.constant 0 : i32
    return %c0_i32, %c0_i32_0 : i32, i32
  }
  func.func @transform_3(%arg0: i32, %arg1: i32) -> (i32, i32) {
    %c0_i32 = arith.constant 0 : i32
    %c0_i32_0 = arith.constant 0 : i32
    return %c0_i32, %arg1 : i32, i32
  }
  func.func @transform_4(%arg0: i32, %arg1: i32) -> (i32, i32) {
    %c0_i32 = arith.constant 0 : i32
    %c0_i32_0 = arith.constant 0 : i32
    return %c0_i32, %arg1 : i32, i32
  }
  func.func @transform_5(%arg0: i32, %arg1: i32) -> (i32, i32) {
    %c0_i32 = arith.constant 0 : i32
    return %arg0, %arg1 : i32, i32
  }
}

</mosaic_0001>

<bundles_post_ra>
// kernel: lstm_decoder_pallas.3
= control target key start
LH: loop header
LB: loop body
LE: loop exit
PB: predicated region body
PF: predicated region fallthrough
CT: control target
= control target key end

     0   :  { %vm25_vm0 = vcmask 130048   ;;  %s172_s1 = inlined_call_operand.vmem [shape: f32[16,128], index: 1, kind: input, shape index: {}]   ;;  %s173_s0 = inlined_call_operand.vmem [shape: f32[16,16], index: 0, kind: input, shape index: {}]   ;;  %s174_s2 = inlined_call_operand.vmem [shape: f32[1,128], index: 2, kind: input, shape index: {}]   ;;  %s175_s3 = inlined_call_operand.vmem [shape: f32[16,128], index: 3, kind: output, shape index: {}]  }
   0x1   :  { %v16_v0 = vld [vmem:[%s172_s1] sm:$0xff]  ;;  %v17_v1 = vld [vmem:[%s172_s1 + $0x8] sm:$0xff] }
   0x2   :  { %v14_v2 = vld [vmem:[%s173_s0] sm:$0xff]  ;;  %v127_v3 = vpack.c.bf16 %v17_v1, %v16_v0  ;;  %v15_v4 = vld [vmem:[%s173_s0 + $0x8] sm:$0xff] }
   0x3   :  { %124 = vmatprep.mubr.msk.f32.mxu0 %vm25_vm0, %v14_v2  ;;  %v113_v5 = vld [vmem:[%s174_s2] ss:$0 sm:$0xff] }
   0x4   :  { %128 = vmatprep.subr.bf16.mxu0 %v127_v3 }
   0x5   :  { %130 = vmatpush3.bf16.msra.mxu0 %v127_v3 }
   0x8   :  { %125 = vmatmul.mubr.msk.f32.vlgmr.msra.gmra.mrb[0].mxu0 %vm25_vm0, %v15_v4 }
  0xdb   :  { %v126_v6 = vpop.f32.mrb[0].mxu0 }
  0xdc   :  { %v104_v7 = vadd.f32 %v126_v6, %v113_v5  ;;  %v98_v8 = vpop.f32.mrb[1].mxu0 }
  0xdd   :  { %v99_v9 = vadd.f32 %v113_v5, %v98_v8 }
  0xde   :  { %108 = vst [vmem:[%s175_s3 + $0x8] sm:$0xff] %v104_v7 }
  0xdf   :  { %107 = vst [vmem:[%s175_s3] sm:$0xff] %v99_v9 }

// kernel: lstm_decoder_pallas.4
= control target key start
LH: loop header
LB: loop body
LE: loop exit
PB: predicated region body
PF: predicated region fallthrough
CT: control target
= control target key end

     0   :  { %14 = vsyncpa [#allocation8], 0  ;;  %s2492_s0 = inlined_call_operand.vmem [shape: f32[2,2,32], index: 0, kind: input, shape index: {}]   ;;  %s2493_s1 = inlined_call_operand.vmem [shape: f32[2,2,32], index: 1, kind: input, shape index: {}]   ;;  %s2494_s2 = inlined_call_operand.vmem [shape: f32[8,2,128], index: 2, kind: input, shape index: {}]   ;;  %s2495_s3 = inlined_call_operand.vmem [shape: f32[32,128], index: 3, kind: input, shape index: {}]   ;;  %s2496_s4 = inlined_call_operand.vmem [shape: f32[64,128], index: 4, kind: input, shape index: {}]   ;;  %s2497_s5 = inlined_call_operand.vmem [shape: f32[1,128], index: 5, kind: input, shape index: {}]   ;;  %s2498_s6 = inlined_call_operand.vmem [shape: f32[8,2,32], index: 6, kind: output, shape index: {0}]   ;;  %s2499_s7 = inlined_call_operand.hbm [shape: f32[2,2,32], index: 7, kind: output, shape index: {1}]   ;;  %s2500_s8 = inlined_call_operand.hbm [shape: f32[2,2,32], index: 8, kind: output, shape index: {2}]  }
   0x1   :  { %15 = vsyncpa [#allocation10], 0  ;;  %s2182_s27 = smov 0   ;;  %s2184_s28 = smov 0  }
   0x2   :  { %s2186_s29 = smov 0  }
   0x3 LB: > { %s1636_s30 = sadd.s32 4294967295, %s2126_s29   ;;  %s30_s9 = sadd.s32 1, %s2122_s28  ;;  %s2126_s29 = sphi %s2186_s29, %s21_s29   ;;  %s2122_s28 = sphi %s2184_s28, %s2503_s28   ;;  %s2118_s27 = sphi %s2182_s27, %s2502_s27  }
   0x4   : > { %p31_p0 = scmp.ge.s32.totalorder %s30_s9, 2  ;;  %p1642_p1 = scmp.ge.s32.totalorder %s2126_s29, 1 }
   0x5   : > { %p235_p2 = scmp.lt.s32.totalorder %s2126_s29, 3 }
   0x6   : > { %s2505_s9 = smov (%p31_p0, %s30_s9), 0 }
   0x7   : > { %p236_p3 = pnand %p1642_p1, %p235_p2 }
   0x8   : > { %s1643_s10 = sshll.u32 (!%p236_p3), %s2118_s27, 2  ;;  %p1647_p5 = scmp.ne.s32.totalorder (!%p236_p3), %s2118_s27, 0 }
   0x9   : > { %239 = sbr.rel (%p236_p3) target bundleno = 3995 (0xf9b), region = 32  ;;  %p286_p4 = scmp.lt.s32.totalorder (!%p236_p3), %s1643_s10, 7 }
  0x10   : > { %s2507_s10 = smov (!%p286_p4, %s1643_s10), 7  ;;  %306 = sbr.rel (%p1647_p5) target bundleno = 45 (0x2d), region = 36 }
  0x11   : > { %s1644_s11 = sshll.u32 %s2507_s10, 1 }
  0x12   : > { %s2207_s14 = scalar_lea.vmem %s2494_s2, %s1644_s11  ;;  %s2212_s17 = scalar_lea.vmem %s2498_s6, %s1644_s11 }
  0x17   : > { %v339_v0 = vld [vmem:[%s2495_s3] sm:$0xff]  ;;  %v341_v1 = vld [vmem:[%s2495_s3 + $0x8] sm:$0xff]  ;;  %v343_v2 = vld [vmem:[%s2495_s3 + $0x10] sm:$0xff] }
  0x18   : > { %340 = vst [vmem:[#allocation4] sm:$0xff] %v339_v0  ;;  %342 = vst [vmem:[#allocation4 + $0x8] sm:$0xff] %v341_v1  ;;  %v345_v3 = vld [vmem:[%s2495_s3 + $0x18] sm:$0xff] }
  0x19   : > { %344 = vst [vmem:[#allocation4 + $0x10] sm:$0xff] %v343_v2  ;;  %346 = vst [vmem:[#allocation4 + $0x18] sm:$0xff] %v345_v3 }
  0x1a   : > { %354 = vsyncadd [#allocation11], 512 }
  0x1b   : > { %2102 = dma.done.wait [#allocation11], 512 }
  0x1c   : > { %2103 = vsyncadd [#allocation11], 4294966784 }
  0x1d   : > { %v390_v4 = vld [vmem:[%s2496_s4] sm:$0xff]  ;;  %v392_v5 = vld [vmem:[%s2496_s4 + $0x8] sm:$0xff]  ;;  %v394_v6 = vld [vmem:[%s2496_s4 + $0x10] sm:$0xff] }
  0x1e   : > { %391 = vst [vmem:[#allocation5] sm:$0xff] %v390_v4  ;;  %393 = vst [vmem:[#allocation5 + $0x8] sm:$0xff] %v392_v5  ;;  %v396_v7 = vld [vmem:[%s2496_s4 + $0x18] sm:$0xff]  ;;  %v398_v8 = vld [vmem:[%s2496_s4 + $0x20] sm:$0xff] }
  0x1f   : > { %395 = vst [vmem:[#allocation5 + $0x10] sm:$0xff] %v394_v6  ;;  %v400_v9 = vld [vmem:[%s2496_s4 + $0x28] sm:$0xff]  ;;  %397 = vst [vmem:[#allocation5 + $0x18] sm:$0xff] %v396_v7  ;;  %v402_v10 = vld [vmem:[%s2496_s4 + $0x30] sm:$0xff] }
  0x20   : > { %399 = vst [vmem:[#allocation5 + $0x20] sm:$0xff] %v398_v8  ;;  %401 = vst [vmem:[#allocation5 + $0x28] sm:$0xff] %v400_v9  ;;  %v404_v11 = vld [vmem:[%s2496_s4 + $0x38] sm:$0xff] }
  0x21   : > { %403 = vst [vmem:[#allocation5 + $0x30] sm:$0xff] %v402_v10  ;;  %405 = vst [vmem:[#allocation5 + $0x38] sm:$0xff] %v404_v11 }
  0x22   : > { %413 = vsyncadd [#allocation13], 1024 }
  0x23   : > { %2104 = dma.done.wait [#allocation13], 1024 }
  0x24   : > { %2105 = vsyncadd [#allocation13], 4294966272 }
  0x25   : > { %v434_v12 = vld [vmem:[%s2497_s5] sm:$0x1] }
  0x26   : > { %435 = vst [vmem:[#allocation6] sm:$0x1] %v434_v12 }
  0x27   : > { %460 = vsyncadd [#allocation15], 16 }
  0x28   : > { %2106 = dma.done.wait [#allocation15], 16 }
  0x29   : > { %2107 = vsyncadd [#allocation15], 4294967280  ;;  %v464_v13 = vld [vmem:[%s2492_s0] sm:$0x3]  ;;  %vm466_vm0 = vcmask 254976  }
  0x2a   : > { %v465_v14 = vld [vmem:[%s2492_s0 + $0x2] sm:$0x3]  ;;  %467 = vst.msk [vmem:[#allocation2] sm:$0x3] %vm466_vm0, %v464_v13  ;;  %v469_v15 = vld [vmem:[%s2493_s1] sm:$0x3] }
  0x2b   : > { %468 = vst.msk [vmem:[#allocation2 + $0x2] sm:$0x3] %vm466_vm0, %v465_v14  ;;  %v470_v16 = vld [vmem:[%s2493_s1 + $0x2] sm:$0x3]  ;;  %471 = vst.msk [vmem:[#allocation3] sm:$0x3] %vm466_vm0, %v469_v15 }
  0x2c   : > { %472 = vst.msk [vmem:[#allocation3 + $0x2] sm:$0x3] %vm466_vm0, %v470_v16 }
  0x2d PF: > { %v475_v17 = vld [vmem:[#allocation4] sm:$0xff]  ;;  %v476_v18 = vld [vmem:[#allocation4 + $0x8] sm:$0xff]  ;;  %v477_v19 = vld [vmem:[#allocation4 + $0x10] sm:$0xff]  ;;  %v2128_v20 = vmov 0.0|0.0   ;;  %vm2129_vm1 = vmmov 0   ;;  %v2130_v23 = vmov 0.0  }
  0x2e   : > { %1857 = vmatprep.subr.bf16.mxu1 %v2128_v20  ;;  %v2267_v21 = vpack.c.bf16 %v476_v18, %v475_v17  ;;  %v478_v22 = vld [vmem:[#allocation4 + $0x18] sm:$0xff]  ;;  %1745 = vmatprep.mubr.msk.f32.mxu1 %vm2129_vm1, %v2130_v23  ;;  %vm479_vm2 = vcmask 261120   ;;  %s2131_s22 = smov 64   ;;  %s2132_s23 = smov 96   ;;  %vm579_vm3 = vcmask 254976   ;;  %v593_v42 = vld [vmem:[#allocation5] sm:$0xff] }
  0x2f   : > { %1875 = vmatprep.subr.bf16.mxu0 %v2128_v20  ;;  %1775 = vmatprep.mubr.msk.f32.mxu0 %vm2129_vm1, %v2130_v23  ;;  %v2275_v24 = vpack.c.bf16 %v478_v22, %v477_v19  ;;  %v473_v26 = vld [vmem:[%s2207_s14] sm:$0x3]  ;;  %s2133_s24 = smov 32   ;;  %v594_v43 = vld [vmem:[#allocation5 + $0x8] sm:$0xff]  ;;  %v595_v44 = vld [vmem:[#allocation5 + $0x10] sm:$0xff]  ;;  %vm608_vm4 = vcmask 523264  }
  0x30   : > { %1859 = vmatpush3.bf16.msra.mxu1 %v2267_v21  ;;  %1877 = vmatpush3.bf16.msra.mxu0 %v2267_v21  ;;  %v2292_v45 = vpack.c.bf16 %v594_v43, %v593_v42  ;;  %v596_v46 = vld [vmem:[#allocation5 + $0x18] sm:$0xff]  ;;  %v597_v48 = vld [vmem:[#allocation5 + $0x20] sm:$0xff]  ;;  %v598_v49 = vld [vmem:[#allocation5 + $0x28] sm:$0xff]  ;;  %p1674_p6 = scmp.ne.s32.totalorder %s2118_s27, 1 }
  0x31   : > { %1860 = vmatprep.subr.bf16.mxu1 %v2128_v20  ;;  %1878 = vmatprep.subr.bf16.mxu0 %v2128_v20  ;;  %v554_v37 = vld [vmem:[#allocation2] sm:$0x3]  ;;  %v2295_v47 = vpack.c.bf16 %v596_v46, %v595_v44  ;;  %v2299_v50 = vpack.c.bf16 %v598_v49, %v597_v48  ;;  %v599_v51 = vld [vmem:[#allocation5 + $0x30] sm:$0xff]  ;;  %v2330_v61 = vld [vmem:[#allocation6] ss:$0 sm:$0xff] }
  0x32   : > { %v474_v25 = vld [vmem:[#allocation3] sm:$0x3]  ;;  %v1653_v1 = vld [vmem:[%s2207_s14 + $0x2] sm:$0x3] }
  0x33   : > { %v587_v41 = vld [vmem:[#allocation3 + $0x2] sm:$0x3]  ;;  %v683_v19 = vld [vmem:[#allocation2 + $0x2] sm:$0x3]  ;;  %v1660_v46 = vld [vmem:[%s2207_s14 + $0x4] sm:$0x3] }
  0x34   : > { %1862 = vmatpush3.bf16.msra.mxu1 %v2275_v24  ;;  %1880 = vmatpush3.bf16.msra.mxu0 %v2275_v24  ;;  %v600_v52 = vld [vmem:[#allocation5 + $0x38] sm:$0xff] }
  0x35   : > { %1863 = vmatprep.subr.bf16.mxu1 %v2128_v20  ;;  %1881 = vmatprep.subr.bf16.mxu0 %v2128_v20  ;;  %v2304_v54 = vpack.c.bf16 %v600_v52, %v599_v51 }
  0x37   : > { %1746 = vmatmul.mubr.msk.f32.vlgmr.msra.gmra.mrb[0].mxu1 %vm479_vm2, %v474_v25 }
  0x38   : > { %1764 = vmatprep.mubr.msk.f32.mxu1 %vm2129_vm1, %v2130_v23  ;;  %1865 = vmatpush3.bf16.msra.mxu1 %v2292_v45 }
  0x39   : > { %1866 = vmatprep.subr.bf16.mxu1 %v2128_v20 }
  0x3c   : > { %1868 = vmatpush3.bf16.msra.mxu1 %v2295_v47 }
  0x3d   : > { %1869 = vmatprep.subr.bf16.mxu1 %v2128_v20 }
  0x40   : > { %1871 = vmatpush3.bf16.msra.mxu1 %v2299_v50 }
  0x41   : > { %1872 = vmatprep.subr.bf16.mxu1 %v2128_v20 }
  0x44   : > { %1874 = vmatpush3.bf16.msra.mxu1 %v2304_v54 }
  0x45   : > { %1893 = vmatprep.subr.bf16.mxu1 %v2128_v20 }
 0x10a   : > { %v549_v27 = vpop.f32.mrb[0].mxu1 }
 0x10b   : > { %v553_v28 = vadd.f32 %v549_v27, %v473_v26  ;;  %v1747_v29 = vpop.f32.mrb[1].mxu1 }
 0x10d   : > { %1974 = vtanh.f32 %v553_v28  ;;  %v1649_v31 = vmul.f32 -1.442695, %v553_v28 }
 0x10f   : > { %1976 = vpow2.f32 %v1649_v31 }
 0x117   : > { %v1975_v30 = vpop.eup %1974 }
 0x118   : > { %564 = vrot.lane.b32.xlu0 %v1975_v30, %s2131_s22 }
 0x119   : > { %v1977_v32 = vpop.eup %1976 }
 0x11a   : > { %v558_v33 = vadd.f32 1.0, %v1977_v32 }
 0x11c   : > { %1978 = vrcp.f32 %v558_v33 }
 0x126   : > { %v1979_v34 = vpop.eup %1978 }
 0x127   : > { %v562_v38 = vmul.f32 %v1979_v34, %v554_v37 }
 0x18a   : > { %v565_v35 = vpop.permute.xlu0 %564 }
 0x18b   : > { %v567_v36 = vmul.f32 %v1979_v34, %v565_v35 }
 0x18d   : > { %569 = vrot.lane.b32.xlu0 %v567_v36, %s2132_s23 }
 0x191   : > { %589 = vrot.lane.b32.xlu0 %v587_v41, %s2133_s24 }
 0x1ff   : > { %v570_v39 = vpop.permute.xlu0 %569 }
 0x200   : > { %v572_v40 = vadd.f32 %v570_v39, %v562_v38 }
 0x202   : > { %1980 = vtanh.f32 %v572_v40  ;;  %580 = vst.msk [vmem:[#allocation2] sm:$0x3] %vm579_vm3, %v572_v40 }
 0x203   : > { %v590_v57 = vpop.permute.xlu0 %589 }
 0x209   : > { %v796_v27 = vld [vmem:[#allocation2] sm:$0x3] }
 0x20c   : > { %v1981_v53 = vpop.eup %1980 }
 0x20d   : > { %575 = vrot.lane.b32.xlu1 %v1981_v53, %s2131_s22 }
 0x27f   : > { %v576_v55 = vpop.permute.xlu1 %575 }
 0x280   : > { %v578_v56 = vmul.f32 %v1979_v34, %v576_v55 }
 0x282   : > { %582 = vrot.lane.b32.xlu1 %v578_v56, %s2131_s22 }
 0x2f4   : > { %v583_v58 = vpop.permute.xlu1 %582 }
 0x2f5   : > { %585 = vst.msk [vmem:[#allocation3] sm:$0x3] %vm579_vm3, %v583_v58  ;;  %v592_v59 = vsel %vm479_vm2, %v583_v58, %v590_v57 }
 0x2f6   : > { %1765 = vmatmul.mubr.msk.f32.vlgmr.msra.gmra.mrb[2].mxu1 %vm608_vm4, %v592_v59 }
 0x2f7   : > { %1895 = vmatpush3.bf16.msra.mxu1 %v2267_v21  ;;  %1805 = vmatprep.mubr.msk.f32.mxu1 %vm2129_vm1, %v2130_v23 }
 0x2f8   : > { %1896 = vmatprep.subr.bf16.mxu1 %v2128_v20 }
 0x2fb   : > { %1898 = vmatpush3.bf16.msra.mxu1 %v2275_v24 }
 0x2fc   : > { %v717_v60 = vld [vmem:[#allocation3] sm:$0x3]  ;;  %1899 = vmatprep.subr.bf16.mxu1 %v2128_v20 }
 0x2fd   : > { %1776 = vmatmul.mubr.msk.f32.vlgmr.msra.gmra.mrb[0].mxu0 %vm479_vm2, %v717_v60 }
 0x2fe   : > { %1883 = vmatpush3.bf16.msra.mxu0 %v2292_v45  ;;  %1794 = vmatprep.mubr.msk.f32.mxu0 %vm2129_vm1, %v2130_v23 }
 0x2ff   : > { %1884 = vmatprep.subr.bf16.mxu0 %v2128_v20 }
 0x302   : > { %1886 = vmatpush3.bf16.msra.mxu0 %v2295_v47 }
 0x303   : > { %1887 = vmatprep.subr.bf16.mxu0 %v2128_v20 }
 0x306   : > { %1889 = vmatpush3.bf16.msra.mxu0 %v2299_v50 }
 0x307   : > { %1890 = vmatprep.subr.bf16.mxu0 %v2128_v20 }
 0x30a   : > { %1892 = vmatpush3.bf16.msra.mxu0 %v2304_v54 }
 0x30b   : > { %1911 = vmatprep.subr.bf16.mxu0 %v2128_v20 }
 0x3c9   : > { %v678_v62 = vpop.f32.mrb[2].mxu1 }
 0x3ca   : > { %v679_v63 = vadd.f32 %v2330_v61, %v678_v62  ;;  %v1766_v0 = vpop.f32.mrb[3].mxu1 }
 0x3cc   : > { %1982 = vtanh.f32 %v679_v63  ;;  %v1652_v7 = vmul.f32 -1.442695, %v679_v63 }
 0x3d0   : > { %v791_v2 = vpop.f32.mrb[0].mxu0 }
 0x3d1   : > { %v795_v3 = vadd.f32 %v1653_v1, %v791_v2  ;;  %v1777_v4 = vpop.f32.mrb[1].mxu0 }
 0x3d3   : > { %1984 = vtanh.f32 %v795_v3  ;;  %v1655_v8 = vmul.f32 -1.442695, %v795_v3 }
 0x3d4   : > { %1986 = vpow2.f32 %v1652_v7 }
 0x3d5   : > { %1988 = vpow2.f32 %v1655_v8 }
 0x3d6   : > { %v1983_v5 = vpop.eup %1982 }
 0x3d7   : > { %693 = vrot.lane.b32.xlu1 %v1983_v5, %s2131_s22 }
 0x3dd   : > { %v1985_v6 = vpop.eup %1984 }
 0x3de   : > { %806 = vrot.lane.b32.xlu1 %v1985_v6, %s2131_s22  ;;  %v1987_v9 = vpop.eup %1986 }
 0x3df   : > { %v687_v10 = vadd.f32 1.0, %v1987_v9  ;;  %v1989_v11 = vpop.eup %1988 }
 0x3e0   : > { %v800_v12 = vadd.f32 1.0, %v1989_v11 }
 0x3e1   : > { %1990 = vrcp.f32 %v687_v10 }
 0x3e2   : > { %1992 = vrcp.f32 %v800_v12 }
 0x3eb   : > { %v1991_v13 = vpop.eup %1990 }
 0x3ec   : > { %v1993_v16 = vpop.eup %1992  ;;  %v691_v22 = vmul.f32 %v1991_v13, %v683_v19 }
 0x3ed   : > { %v804_v28 = vmul.f32 %v1993_v16, %v796_v27 }
 0x449   : > { %v694_v14 = vpop.permute.xlu1 %693 }
 0x44a   : > { %v696_v15 = vmul.f32 %v1991_v13, %v694_v14 }
 0x44c   : > { %698 = vrot.lane.b32.xlu0 %v696_v15, %s2132_s23 }
 0x450   : > { %v807_v17 = vpop.permute.xlu1 %806 }
 0x451   : > { %v809_v18 = vmul.f32 %v1993_v16, %v807_v17 }
 0x453   : > { %811 = vrot.lane.b32.xlu0 %v809_v18, %s2132_s23 }
 0x4be   : > { %v699_v25 = vpop.permute.xlu0 %698 }
 0x4bf   : > { %v701_v26 = vadd.f32 %v699_v25, %v691_v22 }
 0x4c1   : > { %1994 = vtanh.f32 %v701_v26  ;;  %708 = vst.msk [vmem:[#allocation2 + $0x2] sm:$0x3] %vm579_vm3, %v701_v26 }
 0x4c5   : > { %v812_v29 = vpop.permute.xlu0 %811 }
 0x4c6   : > { %v814_v30 = vadd.f32 %v812_v29, %v804_v28 }
 0x4c8   : > { %1996 = vtanh.f32 %v814_v30  ;;  %821 = vst.msk [vmem:[#allocation2] sm:$0x3] %vm579_vm3, %v814_v30  ;;  %v921_v3 = vld [vmem:[#allocation2 + $0x2] sm:$0x3] }
 0x4cb   : > { %v1995_v31 = vpop.eup %1994 }
 0x4cc   : > { %704 = vrot.lane.b32.xlu1 %v1995_v31, %s2131_s22 }
 0x4cf   : > { %v1035_v7 = vld [vmem:[#allocation2] sm:$0x3] }
 0x4d2   : > { %v1997_v32 = vpop.eup %1996 }
 0x4d3   : > { %817 = vrot.lane.b32.xlu1 %v1997_v32, %s2131_s22 }
 0x53e   : > { %v705_v33 = vpop.permute.xlu1 %704 }
 0x53f   : > { %v707_v34 = vmul.f32 %v1991_v13, %v705_v33 }
 0x541   : > { %710 = vrot.lane.b32.xlu0 %v707_v34, %s2131_s22 }
 0x545   : > { %v818_v35 = vpop.permute.xlu1 %817 }
 0x546   : > { %v820_v36 = vmul.f32 %v1993_v16, %v818_v35 }
 0x548   : > { %823 = vrot.lane.b32.xlu0 %v820_v36, %s2131_s22 }
 0x5b3   : > { %v711_v37 = vpop.permute.xlu0 %710 }
 0x5b4   : > { %713 = vst.msk [vmem:[#allocation3 + $0x2] sm:$0x3] %vm579_vm3, %v711_v37  ;;  %714 = vst.msk [vmem:[%s2212_s17] sm:$0x3] %vm579_vm3, %v711_v37 }
 0x5ba   : > { %v824_v38 = vpop.permute.xlu0 %823 }
 0x5bb   : > { %826 = vst.msk [vmem:[#allocation3] sm:$0x3] %vm579_vm3, %v824_v38  ;;  %v827_v39 = vld [vmem:[#allocation3 + $0x2] sm:$0x3] }
 0x5bc   : > { %829 = vrot.lane.b32.xlu1 %v827_v39, %s2133_s24 }
 0x5c2   : > { %v956_v40 = vld [vmem:[#allocation3] sm:$0x3] }
 0x5c3   : > { %1806 = vmatmul.mubr.msk.f32.vlgmr.msra.gmra.mrb[4].mxu1 %vm479_vm2, %v956_v40 }
 0x5c4   : > { %1901 = vmatpush3.bf16.msra.mxu1 %v2292_v45  ;;  %1824 = vmatprep.mubr.msk.f32.mxu1 %vm2129_vm1, %v2130_v23 }
 0x5c5   : > { %1902 = vmatprep.subr.bf16.mxu1 %v2128_v20 }
 0x5c8   : > { %1904 = vmatpush3.bf16.msra.mxu1 %v2295_v47 }
 0x5c9   : > { %1905 = vmatprep.subr.bf16.mxu1 %v2128_v20 }
 0x5cc   : > { %1907 = vmatpush3.bf16.msra.mxu1 %v2299_v50 }
 0x5cd   : > { %1908 = vmatprep.subr.bf16.mxu1 %v2128_v20 }
 0x5d0   : > { %1910 = vmatpush3.bf16.msra.mxu1 %v2304_v54 }
 0x62e   : > { %v830_v41 = vpop.permute.xlu1 %829 }
 0x62f   : > { %v832_v42 = vsel %vm479_vm2, %v824_v38, %v830_v41 }
 0x630   : > { %1795 = vmatmul.mubr.msk.f32.vlgmr.msra.gmra.mrb[2].mxu0 %vm608_vm4, %v832_v42 }
 0x631   : > { %1913 = vmatpush3.bf16.msra.mxu0 %v2267_v21  ;;  %1835 = vmatprep.mubr.msk.f32.mxu0 %vm2129_vm1, %v2130_v23 }
 0x632   : > { %1914 = vmatprep.subr.bf16.mxu0 %v2128_v20 }
 0x635   : > { %1916 = vmatpush3.bf16.msra.mxu0 %v2275_v24 }
 0x636   : > { %1917 = vmatprep.subr.bf16.mxu0 %v2128_v20 }
 0x696   : > { %v1030_v43 = vpop.f32.mrb[4].mxu1 }
 0x697   : > { %v1807_v44 = vpop.f32.mrb[5].mxu1  ;;  %v1034_v52 = vadd.f32 %v1660_v46, %v1030_v43 }
 0x699   : > { %v1662_v24 = vmul.f32 -1.442695, %v1034_v52 }
 0x703   : > { %v917_v48 = vpop.f32.mrb[2].mxu0 }
 0x704   : > { %v918_v49 = vadd.f32 %v2330_v61, %v917_v48  ;;  %v1796_v51 = vpop.f32.mrb[3].mxu0 }
 0x706   : > { %1998 = vtanh.f32 %v918_v49  ;;  %v1658_v55 = vmul.f32 -1.442695, %v918_v49 }
 0x707   : > { %2000 = vtanh.f32 %v1034_v52 }
 0x708   : > { %2002 = vpow2.f32 %v1658_v55 }
 0x709   : > { %2004 = vpow2.f32 %v1662_v24 }
 0x710   : > { %v1999_v21 = vpop.eup %1998 }
 0x711   : > { %931 = vrot.lane.b32.xlu0 %v1999_v21, %s2131_s22  ;;  %v2001_v53 = vpop.eup %2000 }
 0x712   : > { %v2003_v56 = vpop.eup %2002 }
 0x713   : > { %v925_v57 = vadd.f32 1.0, %v2003_v56  ;;  %v2005_v58 = vpop.eup %2004 }
 0x714   : > { %v1039_v59 = vadd.f32 1.0, %v2005_v58 }
 0x715   : > { %1045 = vrot.lane.b32.xlu0 %v2001_v53, %s2131_s22  ;;  %2006 = vrcp.f32 %v925_v57 }
 0x716   : > { %2008 = vrcp.f32 %v1039_v59 }
 0x71f   : > { %v2007_v60 = vpop.eup %2006 }
 0x720   : > { %v2009_v0 = vpop.eup %2008  ;;  %v929_v4 = vmul.f32 %v2007_v60, %v921_v3 }
 0x721   : > { %v1043_v8 = vmul.f32 %v2009_v0, %v1035_v7 }
 0x783   : > { %v932_v62 = vpop.permute.xlu0 %931 }
 0x784   : > { %v934_v63 = vmul.f32 %v2007_v60, %v932_v62 }
 0x786   : > { %936 = vrot.lane.b32.xlu1 %v934_v63, %s2132_s23 }
 0x787   : > { %v1046_v1 = vpop.permute.xlu0 %1045 }
 0x788   : > { %v1048_v2 = vmul.f32 %v2009_v0, %v1046_v1 }
 0x78a   : > { %1050 = vrot.lane.b32.xlu1 %v1048_v2, %s2132_s23 }
 0x7f8   : > { %v937_v5 = vpop.permute.xlu1 %936 }
 0x7f9   : > { %v939_v6 = vadd.f32 %v937_v5, %v929_v4 }
 0x7fb   : > { %2010 = vtanh.f32 %v939_v6  ;;  %946 = vst.msk [vmem:[#allocation2 + $0x2] sm:$0x3] %vm579_vm3, %v939_v6 }
 0x7fc   : > { %v1051_v9 = vpop.permute.xlu1 %1050 }
 0x7fd   : > { %v1053_v10 = vadd.f32 %v1051_v9, %v1043_v8 }
 0x7ff   : > { %2012 = vtanh.f32 %v1053_v10  ;;  %1060 = vst.msk [vmem:[#allocation2] sm:$0x3] %vm579_vm3, %v1053_v10 }
 0x802   : > { %v1160_v42 = vld [vmem:[#allocation2 + $0x2] sm:$0x3] }
 0x805   : > { %v2011_v11 = vpop.eup %2010 }
 0x806   : > { %942 = vrot.lane.b32.xlu0 %v2011_v11, %s2131_s22  ;;  %v1274_v48 = vld [vmem:[#allocation2] sm:$0x3] }
 0x809   : > { %v2013_v12 = vpop.eup %2012 }
 0x80a   : > { %1056 = vrot.lane.b32.xlu0 %v2013_v12, %s2131_s22 }
 0x878   : > { %v943_v13 = vpop.permute.xlu0 %942 }
 0x879   : > { %v945_v14 = vmul.f32 %v2007_v60, %v943_v13 }
 0x87b   : > { %948 = vrot.lane.b32.xlu1 %v945_v14, %s2131_s22 }
 0x87c   : > { %v1057_v15 = vpop.permute.xlu0 %1056 }
 0x87d   : > { %v1059_v16 = vmul.f32 %v2009_v0, %v1057_v15 }
 0x87f   : > { %1062 = vrot.lane.b32.xlu1 %v1059_v16, %s2131_s22 }
 0x8ed   : > { %v949_v17 = vpop.permute.xlu1 %948 }
 0x8ee   : > { %951 = vst.msk [vmem:[#allocation3 + $0x2] sm:$0x3] %vm579_vm3, %v949_v17  ;;  %1659 = vst.msk [vmem:[%s2212_s17 + $0x2] sm:$0x3] %vm579_vm3, %v949_v17 }
 0x8f1   : > { %v1063_v18 = vpop.permute.xlu1 %1062 }
 0x8f2   : > { %1065 = vst.msk [vmem:[#allocation3] sm:$0x3] %vm579_vm3, %v1063_v18 }
 0x8f5   : > { %v1066_v19 = vld [vmem:[#allocation3 + $0x2] sm:$0x3] }
 0x8f6   : > { %1068 = vrot.lane.b32.xlu0 %v1066_v19, %s2133_s24 }
 0x8f9   : > { %v1195_v22 = vld [vmem:[#allocation3] sm:$0x3] }
 0x8fa   : > { %1836 = vmatmul.mubr.msk.f32.vlgmr.msra.gmra.mrb[4].mxu0 %vm479_vm2, %v1195_v22 }
 0x8fb   : > { %1919 = vmatpush3.bf16.msra.mxu0 %v2292_v45  ;;  %1854 = vmatprep.mubr.msk.f32.mxu0 %vm2129_vm1, %v2130_v23  ;;  %v1667_v23 = vld [vmem:[%s2207_s14 + $0x6] sm:$0x3] }
 0x8fc   : > { %1920 = vmatprep.subr.bf16.mxu0 %v2128_v20 }
 0x8ff   : > { %1922 = vmatpush3.bf16.msra.mxu0 %v2295_v47 }
 0x900   : > { %1923 = vmatprep.subr.bf16.mxu0 %v2128_v20 }
 0x903   : > { %1925 = vmatpush3.bf16.msra.mxu0 %v2299_v50 }
 0x904   : > { %1926 = vmatprep.subr.bf16.mxu0 %v2128_v20 }
 0x907   : > { %1928 = vmatpush3.bf16.msra.mxu0 %v2304_v54 }
 0x968   : > { %v1069_v25 = vpop.permute.xlu0 %1068 }
 0x969   : > { %v1071_v26 = vsel %vm479_vm2, %v1063_v18, %v1069_v25 }
 0x96a   : > { %1825 = vmatmul.mubr.msk.f32.vlgmr.msra.gmra.mrb[6].mxu1 %vm608_vm4, %v1071_v26 }
 0x9cd   : > { %v1269_v45 = vpop.f32.mrb[4].mxu0 }
 0x9ce   : > { %v1837_v27 = vpop.f32.mrb[5].mxu0  ;;  %v1273_v30 = vadd.f32 %v1667_v23, %v1269_v45 }
 0x9d0   : > { %v1669_v31 = vmul.f32 -1.442695, %v1273_v30 }
 0xa3d   : > { %v1156_v28 = vpop.f32.mrb[6].mxu1 }
 0xa3e   : > { %v1157_v29 = vadd.f32 %v2330_v61, %v1156_v28  ;;  %v1826_v47 = vpop.f32.mrb[7].mxu1 }
 0xa40   : > { %2014 = vtanh.f32 %v1157_v29  ;;  %v1665_v54 = vmul.f32 -1.442695, %v1157_v29 }
 0xa41   : > { %2016 = vtanh.f32 %v1273_v30 }
 0xa42   : > { %2018 = vpow2.f32 %v1665_v54 }
 0xa43   : > { %2020 = vpow2.f32 %v1669_v31 }
 0xa4a   : > { %v2015_v50 = vpop.eup %2014 }
 0xa4b   : > { %1170 = vrot.lane.b32.xlu1 %v2015_v50, %s2131_s22  ;;  %v2017_v20 = vpop.eup %2016 }
 0xa4c   : > { %v2019_v32 = vpop.eup %2018 }
 0xa4d   : > { %v1164_v33 = vadd.f32 1.0, %v2019_v32  ;;  %v2021_v34 = vpop.eup %2020 }
 0xa4e   : > { %v1278_v35 = vadd.f32 1.0, %v2021_v34 }
 0xa4f   : > { %1284 = vrot.lane.b32.xlu1 %v2017_v20, %s2131_s22  ;;  %2022 = vrcp.f32 %v1164_v33 }
 0xa50   : > { %2024 = vrcp.f32 %v1278_v35 }
 0xa59   : > { %v2023_v36 = vpop.eup %2022 }
 0xa5a   : > { %v2025_v39 = vpop.eup %2024  ;;  %v1168_v43 = vmul.f32 %v2023_v36, %v1160_v42 }
 0xa5b   : > { %v1282_v49 = vmul.f32 %v2025_v39, %v1274_v48 }
 0xabd   : > { %v1171_v37 = vpop.permute.xlu1 %1170 }
 0xabe   : > { %v1173_v38 = vmul.f32 %v2023_v36, %v1171_v37 }
 0xac0   : > { %1175 = vrot.lane.b32.xlu0 %v1173_v38, %s2132_s23 }
 0xac1   : > { %v1285_v40 = vpop.permute.xlu1 %1284 }
 0xac2   : > { %v1287_v41 = vmul.f32 %v2025_v39, %v1285_v40 }
 0xac4   : > { %1289 = vrot.lane.b32.xlu0 %v1287_v41, %s2132_s23 }
 0xb32   : > { %v1176_v44 = vpop.permute.xlu0 %1175 }
 0xb33   : > { %v1178_v46 = vadd.f32 %v1176_v44, %v1168_v43 }
 0xb35   : > { %2026 = vtanh.f32 %v1178_v46  ;;  %1185 = vst.msk [vmem:[#allocation2 + $0x2] sm:$0x3] %vm579_vm3, %v1178_v46 }
 0xb36   : > { %v1290_v51 = vpop.permute.xlu0 %1289 }
 0xb37   : > { %v1292_v52 = vadd.f32 %v1290_v51, %v1282_v49 }
 0xb39   : > { %2028 = vtanh.f32 %v1292_v52  ;;  %1299 = vst.msk [vmem:[#allocation2] sm:$0x3] %vm579_vm3, %v1292_v52 }
 0xb3c   : > { %v1399_v10 = vld [vmem:[#allocation2 + $0x2] sm:$0x3] }
 0xb3f   : > { %v2027_v21 = vpop.eup %2026 }
 0xb40   : > { %1181 = vrot.lane.b32.xlu1 %v2027_v21, %s2131_s22  ;;  %v1436_v17 = vld [vmem:[#allocation2] sm:$0x3] (!%p1674_p6) }
 0xb41   : > { %1438 = vst.msk [vmem:[#allocation7] sm:$0x3] (!%p1674_p6), %vm579_vm3, %v1436_v17 }
 0xb43   : > { %v2029_v53 = vpop.eup %2028 }
 0xb44   : > { %1295 = vrot.lane.b32.xlu1 %v2029_v53, %s2131_s22 }
 0xbb2   : > { %v1182_v55 = vpop.permute.xlu1 %1181 }
 0xbb3   : > { %v1184_v24 = vmul.f32 %v2023_v36, %v1182_v55 }
 0xbb5   : > { %1187 = vrot.lane.b32.xlu0 %v1184_v24, %s2131_s22 }
 0xbb6   : > { %v1296_v56 = vpop.permute.xlu1 %1295 }
 0xbb7   : > { %v1298_v57 = vmul.f32 %v2025_v39, %v1296_v56 }
 0xbb9   : > { %1301 = vrot.lane.b32.xlu0 %v1298_v57, %s2131_s22 }
 0xc27   : > { %v1188_v58 = vpop.permute.xlu0 %1187 }
 0xc28   : > { %1190 = vst.msk [vmem:[#allocation3 + $0x2] sm:$0x3] %vm579_vm3, %v1188_v58  ;;  %1666 = vst.msk [vmem:[%s2212_s17 + $0x4] sm:$0x3] %vm579_vm3, %v1188_v58 }
 0xc2b   : > { %v1302_v59 = vpop.permute.xlu0 %1301 }
 0xc2c   : > { %1304 = vst.msk [vmem:[#allocation3] sm:$0x3] %vm579_vm3, %v1302_v59 }
 0xc2f   : > { %v1305_v60 = vld [vmem:[#allocation3 + $0x2] sm:$0x3] }
 0xc30   : > { %1307 = vrot.lane.b32.xlu1 %v1305_v60, %s2133_s24 }
 0xc33   : > { %v1440_v19 = vld [vmem:[#allocation3] sm:$0x3] (!%p1674_p6) }
 0xc34   : > { %1442 = vst.msk [vmem:[#allocation9] sm:$0x3] (!%p1674_p6), %vm579_vm3, %v1440_v19 }
 0xca2   : > { %v1308_v62 = vpop.permute.xlu1 %1307 }
 0xca3   : > { %v1310_v63 = vsel %vm479_vm2, %v1302_v59, %v1308_v62 }
 0xca4   : > { %1855 = vmatmul.mubr.msk.f32.vlgmr.msra.gmra.mrb[6].mxu0 %vm608_vm4, %v1310_v63 }
 0xd77   : > { %v1395_v0 = vpop.f32.mrb[6].mxu0 }
 0xd78   : > { %v1396_v1 = vadd.f32 %v2330_v61, %v1395_v0  ;;  %v1856_v2 = vpop.f32.mrb[7].mxu0 }
 0xd7a   : > { %2030 = vtanh.f32 %v1396_v1  ;;  %v1672_v4 = vmul.f32 -1.442695, %v1396_v1 }
 0xd7c   : > { %2032 = vpow2.f32 %v1672_v4 }
 0xd84   : > { %v2031_v3 = vpop.eup %2030 }
 0xd85   : > { %1409 = vrot.lane.b32.xlu0 %v2031_v3, %s2131_s22 }
 0xd86   : > { %v2033_v5 = vpop.eup %2032 }
 0xd87   : > { %v1403_v6 = vadd.f32 1.0, %v2033_v5 }
 0xd89   : > { %2034 = vrcp.f32 %v1403_v6 }
 0xd93   : > { %v2035_v7 = vpop.eup %2034 }
 0xd94   : > { %v1407_v11 = vmul.f32 %v2035_v7, %v1399_v10 }
 0xdf7   : > { %v1410_v8 = vpop.permute.xlu0 %1409 }
 0xdf8   : > { %v1412_v9 = vmul.f32 %v2035_v7, %v1410_v8 }
 0xdfa   : > { %1414 = vrot.lane.b32.xlu1 %v1412_v9, %s2132_s23 }
 0xe6c   : > { %v1415_v12 = vpop.permute.xlu1 %1414 }
 0xe6d   : > { %v1417_v61 = vadd.f32 %v1415_v12, %v1407_v11 }
 0xe6f   : > { %2036 = vtanh.f32 %v1417_v61  ;;  %1424 = vst.msk [vmem:[#allocation2 + $0x2] sm:$0x3] %vm579_vm3, %v1417_v61 }
 0xe76   : > { %v1437_v18 = vld [vmem:[#allocation2 + $0x2] sm:$0x3] (!%p1674_p6) }
 0xe77   : > { %1439 = vst.msk [vmem:[#allocation7 + $0x2] sm:$0x3] (!%p1674_p6), %vm579_vm3, %v1437_v18 }
 0xe79   : > { %v2037_v13 = vpop.eup %2036 }
 0xe7a   : > { %1420 = vrot.lane.b32.xlu0 %v2037_v13, %s2131_s22 }
 0xeec   : > { %v1421_v14 = vpop.permute.xlu0 %1420 }
 0xeed   : > { %v1423_v15 = vmul.f32 %v2035_v7, %v1421_v14 }
 0xeef   : > { %1426 = vrot.lane.b32.xlu1 %v1423_v15, %s2131_s22 }
 0xf5c   : > { %1435 = sbr.rel (%p1674_p6) target bundleno = 3947 (0xf6b), region = 141 }
 0xf61   : > { %v1427_v16 = vpop.permute.xlu1 %1426 }
 0xf62   : > { %1429 = vst.msk [vmem:[#allocation3 + $0x2] sm:$0x3] %vm579_vm3, %v1427_v16  ;;  %1673 = vst.msk [vmem:[%s2212_s17 + $0x6] sm:$0x3] %vm579_vm3, %v1427_v16 }
 0xf69   : > { %v1441_v22 = vld [vmem:[#allocation3 + $0x2] sm:$0x3] }
 0xf6a   : > { %1443 = vst.msk [vmem:[#allocation9 + $0x2] sm:$0x3] %vm579_vm3, %v1441_v22 }
 0xf6b PF: > { %p2431_p7 = scmp.eq.s32.totalorder %s1636_s30, 1  ;;  %s2134_s27 = smov [#allocation7]  }
 0xf6c   : > { %s1464_s17 = sshll.u32 %s2134_s27, 4  ;;  %s2135_s25 = smov [#allocation9]   ;;  %s1465_s17 = int_to_ptr.vmem [resolvable:$true] %s1464_s17 }
 0xf6d   : > { %s1479_s26 = sshll.u32 %s2135_s25, 4  ;;  %s2038_s10 = scalar_lea.vmem %s1465_s17, 64  ;;  %s1480_s26 = int_to_ptr.vmem [resolvable:$true] %s1479_s26 }
 0xf6e   : > { %p2039_p8 = scmp.ne.s32.totalorder %s1465_s17, %s2038_s10  ;;  %p2045_p11 = scmp.lt.s32.totalorder %s1465_s17, %s1465_s17 }
 0xf6f   : > { %p2046_p12 = scmp.lt.s32.totalorder %s2038_s10, %s2038_s10 }
 0xf70   : > { %p2040_p9 = pnand %p2039_p8, %p2431_p7 }
 0xf71   : > { %p2047_p13 = por %p2046_p12, %p2045_p11 }
 0xf72   : > { %p2041_p10 = pneg %p2040_p9 }
 0xf74   : > { %p2048_p0 = pnand %p2047_p13, %p2041_p10 }
 0xf76   : > { %2051 = shalt.err (!%p2048_p0)
}
 0xf77   : > { %s2052_s12 = scalar_lea.hbm %s2499_s7, 64 }
 0xf78   : > { %p2053_p1 = scmp.ne.s32.totalorder %s2499_s7, %s2052_s12  ;;  %p2058_p4 = scmp.lt.u32.totalorder %s2052_s12, %s2499_s7 }
 0xf7a   : > { %p2054_p2 = pnand %p2053_p1, %p2431_p7 }
 0xf7c   : > { %p2055_p3 = pneg %p2054_p2 }
 0xf7e   : > { %p2060_p5 = pnand %p2058_p4, %p2055_p3 }
 0xf80   : > { %2063 = shalt.err (!%p2060_p5)
}
 0xf81   : > { %s2136_s19 = smov 2   ;;  %s2064_s22 = scalar_lea.vmem %s1480_s26, 64 }
 0xf82   : > { %1930 = dma.vmem_to_hbm [thread:$0]  (%p2431_p7), %s1465_s17, 64, %s2499_s7, [#allocation8], %s2133_s24, %s2133_s24, %s2136_s19  }
 0xf83   : > { %p2065_p6 = scmp.ne.s32.totalorder %s1480_s26, %s2064_s22  ;;  %p2071_p10 = scmp.lt.s32.totalorder %s1480_s26, %s1480_s26 }
 0xf84   : > { %p2072_p11 = scmp.lt.s32.totalorder %s2064_s22, %s2064_s22 }
 0xf85   : > { %p2066_p8 = pnand %p2065_p6, %p2431_p7 }
 0xf86   : > { %p2073_p12 = por %p2072_p11, %p2071_p10 }
 0xf87   : > { %p2067_p9 = pneg %p2066_p8 }
 0xf89   : > { %p2074_p13 = pnand %p2073_p12, %p2067_p9 }
 0xf8b   : > { %2077 = shalt.err (!%p2074_p13)
}
 0xf8c   : > { %s2078_s25 = scalar_lea.hbm %s2500_s8, 64 }
 0xf8d   : > { %p2079_p0 = scmp.ne.s32.totalorder %s2500_s8, %s2078_s25  ;;  %p2084_p3 = scmp.lt.u32.totalorder %s2078_s25, %s2500_s8 }
 0xf8f   : > { %p2080_p1 = pnand %p2079_p0, %p2431_p7 }
 0xf91   : > { %p2081_p2 = pneg %p2080_p1 }
 0xf93   : > { %p2086_p4 = pnand %p2084_p3, %p2081_p2 }
 0xf95   : > { %2089 = shalt.err (!%p2086_p4)
}
 0xf96   : > { %1932 = dma.vmem_to_hbm [thread:$0]  (%p2431_p7), %s1480_s26, 64, %s2500_s8, [#allocation10], %s2133_s24, %s2133_s24, %s2136_s19  }
 0xf97   : > { %2109 = dma.done.wait (%p2431_p7), [#allocation8], 64  }
 0xf98   : > { %2111 = vsyncadd (%p2431_p7), [#allocation8], 4294967232 }
 0xf99   : > { %2113 = dma.done.wait (%p2431_p7), [#allocation10], 64  }
 0xf9a   : > { %2115 = vsyncadd (%p2431_p7), [#allocation10], 4294967232 }
 0xf9b PF: > { %s21_s29 = sadd.s32 1, %s2126_s29   ;;  %s2502_s27 = smov %s2122_s28 }
 0xf9c   : > { %p18_p5 = scmp.ge.s32.totalorder %s21_s29, 4   ;;  %s2503_s28 = smov %s2505_s9 }
 0xf9e   :  { %20 = sbr.rel (!%p18_p5) target bundleno = 3 (0x3), region = 230 }
 0xfa5   :  { %1510 = vsyncpa [#allocation8], 1 }
 0xfa6   :  { %1512 = vsyncpa [#allocation8 + $0x1], 1 }
 0xfa7   :  { %1513 = vsyncpa [#allocation10], 1 }

// kernel: lstm_decoder_pallas.5
= control target key start
LH: loop header
LB: loop body
LE: loop exit
PB: predicated region body
PF: predicated region fallthrough
CT: control target
= control target key end

     0   :  { %vm34_vm0 = vcmask 261120   ;;  %s493_s0 = inlined_call_operand.vmem [shape: f32[16,32], index: 0, kind: input, shape index: {}]   ;;  %s494_s1 = inlined_call_operand.vmem [shape: f32[32,128], index: 1, kind: input, shape index: {}]   ;;  %s495_s2 = inlined_call_operand.vmem [shape: f32[1,128], index: 2, kind: input, shape index: {}]   ;;  %s496_s3 = inlined_call_operand.vmem [shape: f32[128,64], index: 3, kind: input, shape index: {}]   ;;  %s497_s4 = inlined_call_operand.vmem [shape: f32[1,64], index: 4, kind: input, shape index: {}]   ;;  %s498_s5 = inlined_call_operand.hbm [shape: f32[16,64], index: 5, kind: output, shape index: {}]  }
   0x1   :  { %v23_v0 = vld [vmem:[%s494_s1] sm:$0xff]  ;;  %v24_v1 = vld [vmem:[%s494_s1 + $0x8] sm:$0xff]  ;;  %v25_v2 = vld [vmem:[%s494_s1 + $0x10] sm:$0xff] }
   0x2   :  { %v307_v3 = vpack.c.bf16 %v24_v1, %v23_v0  ;;  %v26_v4 = vld [vmem:[%s494_s1 + $0x18] sm:$0xff]  ;;  %v21_v5 = vld [vmem:[%s493_s0] sm:$0xff]  ;;  %v117_v8 = vld [vmem:[%s496_s3 + $0x8] sm:$0xff] }
   0x3   :  { %v311_v6 = vpack.c.bf16 %v26_v4, %v25_v2  ;;  %269 = vmatprep.mubr.msk.f32.mxu0 %vm34_vm0, %v21_v5  ;;  %v116_v7 = vld [vmem:[%s496_s3] sm:$0xff]  ;;  %v118_v9 = vld [vmem:[%s496_s3 + $0x10] sm:$0xff]  ;;  %v119_v11 = vld [vmem:[%s496_s3 + $0x18] sm:$0xff] }
   0x4   :  { %308 = vmatprep.subr.bf16.mxu0 %v307_v3  ;;  %v315_v10 = vpack.c.bf16 %v117_v8, %v116_v7  ;;  %v319_v12 = vpack.c.bf16 %v119_v11, %v118_v9  ;;  %v120_v13 = vld [vmem:[%s496_s3 + $0x20] sm:$0xff]  ;;  %v121_v14 = vld [vmem:[%s496_s3 + $0x28] sm:$0xff] }
   0x5   :  { %310 = vmatpush3.bf16.msra.mxu0 %v307_v3 }
   0x6   :  { %312 = vmatprep.subr.bf16.mxu0 %v311_v6  ;;  %316 = vmatprep.subr.bf16.mxu1 %v315_v10 }
   0x7   :  { %318 = vmatpush3.bf16.msra.mxu1 %v315_v10 }
   0x8   :  { %10 = vsyncpa [#allocation3], 0  ;;  %320 = vmatprep.subr.bf16.mxu1 %v319_v12  ;;  %v323_v15 = vpack.c.bf16 %v121_v14, %v120_v13  ;;  %v22_v16 = vld [vmem:[%s493_s0 + $0x8] sm:$0xff]  ;;  %v122_v17 = vld [vmem:[%s496_s3 + $0x30] sm:$0xff]  ;;  %s374_s13 = smov [#allocation2]   ;;  %vm214_vm1 = vcmask 523264  }
   0x9   :  { %314 = vmatpush3.bf16.msra.mxu0 %v311_v6  ;;  %v123_v18 = vld [vmem:[%s496_s3 + $0x38] sm:$0xff]  ;;  %v124_v20 = vld [vmem:[%s496_s3 + $0x40] sm:$0xff]  ;;  %v125_v21 = vld [vmem:[%s496_s3 + $0x48] sm:$0xff]  ;;  %s222_s14 = sshll.u32 %s374_s13, 4  ;;  %s223_s14 = int_to_ptr.vmem [resolvable:$true] %s222_s14 }
   0xa   :  { %v327_v19 = vpack.c.bf16 %v123_v18, %v122_v17  ;;  %v331_v22 = vpack.c.bf16 %v125_v21, %v124_v20  ;;  %v126_v23 = vld [vmem:[%s496_s3 + $0x50] sm:$0xff]  ;;  %v127_v24 = vld [vmem:[%s496_s3 + $0x58] sm:$0xff]  ;;  %v128_v26 = vld [vmem:[%s496_s3 + $0x60] sm:$0xff]  ;;  %p355_p1 = scmp.lt.s32.totalorder %s223_s14, %s223_s14 }
   0xb   :  { %322 = vmatpush3.bf16.msra.mxu1 %v319_v12  ;;  %v335_v25 = vpack.c.bf16 %v127_v24, %v126_v23  ;;  %v129_v27 = vld [vmem:[%s496_s3 + $0x68] sm:$0xff]  ;;  %v130_v29 = vld [vmem:[%s496_s3 + $0x70] sm:$0xff]  ;;  %v131_v30 = vld [vmem:[%s496_s3 + $0x78] sm:$0xff] }
   0xc   :  { %270 = vmatmul.mubr.msk.f32.vlgmr.msra.gmra.mrb[0].mxu0 %vm34_vm0, %v22_v16  ;;  %324 = vmatprep.subr.bf16.mxu1 %v323_v15  ;;  %v339_v28 = vpack.c.bf16 %v129_v27, %v128_v26  ;;  %v343_v31 = vpack.c.bf16 %v131_v30, %v130_v29  ;;  %v233_v32 = vld [vmem:[%s495_s2] ss:$0 sm:$0xff]  ;;  %s350_s2 = scalar_lea.vmem %s223_s14, 256 }
   0xd   :  { %v236_v37 = vld [vmem:[%s497_s4] ss:$0 sm:$0xff]  ;;  %p351_p0 = scmp.ne.s32.totalorder %s223_s14, %s350_s2  ;;  %p356_p2 = scmp.lt.s32.totalorder %s350_s2, %s350_s2 }
   0xf   :  { %326 = vmatpush3.bf16.msra.mxu1 %v323_v15  ;;  %p357_p3 = por %p356_p2, %p355_p1 }
  0x10   :  { %328 = vmatprep.subr.bf16.mxu1 %v327_v19 }
  0x11   :  { %p358_p4 = pnand %p357_p3, %p351_p0 }
  0x13   :  { %330 = vmatpush3.bf16.msra.mxu1 %v327_v19 }
  0x14   :  { %332 = vmatprep.subr.bf16.mxu1 %v331_v22 }
  0x17   :  { %334 = vmatpush3.bf16.msra.mxu1 %v331_v22 }
  0x18   :  { %336 = vmatprep.subr.bf16.mxu1 %v335_v25 }
  0x1b   :  { %338 = vmatpush3.bf16.msra.mxu1 %v335_v25 }
  0x1c   :  { %340 = vmatprep.subr.bf16.mxu1 %v339_v28 }
  0x1f   :  { %342 = vmatpush3.bf16.msra.mxu1 %v339_v28 }
  0x20   :  { %344 = vmatprep.subr.bf16.mxu1 %v343_v31 }
  0x23   :  { %346 = vmatpush3.bf16.msra.mxu1 %v343_v31 }
  0xdf   :  { %v271_v33 = vpop.f32.mrb[0].mxu0 }
  0xe0   :  { %v107_v34 = vpop.f32.mrb[1].mxu0  ;;  %v113_v36 = vadd.f32 %v271_v33, %v233_v32 }
  0xe1   :  { %v108_v35 = vadd.f32 %v233_v32, %v107_v34 }
  0xe3   :  { %304 = vmatprep.mubr.f32.mxu1 %v108_v35 }
  0xe4   :  { %305 = vmatmul.mubr.f32.vlgmr.msra.gmra.mrb[0].mxu1 %v113_v36 }
 0x1b7   :  { %v306_v38 = vpop.f32.mrb[0].mxu1 }
 0x1b8   :  { %v211_v39 = vadd.f32 %v306_v38, %v236_v37  ;;  %v205_v40 = vpop.f32.mrb[1].mxu1 }
 0x1b9   :  { %v206_v41 = vadd.f32 %v236_v37, %v205_v40 }
 0x1ba   :  { %216 = vst.msk [vmem:[#allocation2 + $0x8] sm:$0xff] %vm214_vm1, %v211_v39 }
 0x1bb   :  { %215 = vst.msk [vmem:[#allocation2] sm:$0xff] %vm214_vm1, %v206_v41 }
 0x1bc   :  { %361 = shalt.err (!%p358_p4)
}
 0x1bd   :  { %s362_s4 = scalar_lea.hbm %s498_s5, 256 }
 0x1be   :  { %p363_p5 = scmp.ne.s32.totalorder %s498_s5, %s362_s4  ;;  %p366_p6 = scmp.lt.u32.totalorder %s362_s4, %s498_s5 }
 0x1c0   :  { %p368_p7 = pnand %p366_p6, %p363_p5 }
 0x1c2   :  { %371 = shalt.err (!%p368_p7)
}
 0x1c3   :  { %s375_s20 = smov 128   ;;  %s376_s21 = smov 8  }
 0x1c4   :  { %228 = dma.vmem_to_hbm [thread:$0]  %s223_s14, 256, %s498_s5, [#allocation3], %s375_s20, %s375_s20, %s376_s21  }
 0x1c5   :  { %372 = dma.done.wait [#allocation3], 256  }
 0x1c6   :  { %373 = vsyncadd [#allocation3], 4294967040 }
 0x1c7   :  { %232 = vsyncpa [#allocation3], 1 }

</bundles_post_ra>
